<compile_context>
chip_gen: v7x
topology: tpu7x:2x2x1
jax: 0.10.0
libtpu: 0.0.40
codegen_flags: <defaults>
</compile_context>

<pallas_src>
import functools

import jax
import jax.numpy as jnp
from jax.experimental import pallas as pl
from jax.experimental.pallas import tpu as pltpu

LN_EPS = 1e-5


def _layer_norm(x, gamma, beta):
    # Single-pass LayerNorm over the last axis: var = E[x^2] - E[x]^2
    # (clamped at 0 against rounding), matching nn.LayerNorm's biased variance.
    mean = jnp.mean(x, axis=-1, keepdims=True)
    mean_sq = jnp.mean(x * x, axis=-1, keepdims=True)
    var = jnp.maximum(mean_sq - mean * mean, 0.0)
    inv = jax.lax.rsqrt(var + LN_EPS)
    return (x - mean) * inv * gamma + beta


def logits_predictor_kernel(
    xf_ref,      # [tile, feat_dim]  variable_features tile (compute dtype)
    xl_ref,      # [tile, lat_dim]   variable_latents tile  (compute dtype)
    w1f_ref,     # [feat_dim, H]     first Linear weight, feature rows
    w1l_ref,     # [lat_dim,  H]     first Linear weight, latent rows
    ln1_ref,     # [3, H]   f32      rows: b1, gamma1, beta1
    w2_ref,      # [H, H2]           second Linear weight
    ln2_ref,     # [3, H2]  f32      rows: b2, gamma2, beta2
    head_ref,    # [8, H2]  f32      row0 = W3^T, row1 = b3 (broadcast), rest 0
    out_ref,     # [1, 1, tile] f32  lane-dense connection probabilities
):
    # --- Layer 1: split Linear -> LayerNorm -> ReLU (Dropout = identity) ----
    h1 = jnp.dot(xf_ref[...], w1f_ref[...], preferred_element_type=jnp.float32)
    h1 = h1 + jnp.dot(xl_ref[...], w1l_ref[...], preferred_element_type=jnp.float32)
    h1 = h1 + ln1_ref[0:1, :]
    h1 = _layer_norm(h1, ln1_ref[1:2, :], ln1_ref[2:3, :])
    h1 = jnp.maximum(h1, 0.0)

    # --- Layer 2: Linear -> LayerNorm -> ReLU --------------------------------
    # Cast the activation to the weight dtype (single-pass MXU in the bf16
    # path; no-op in the f32 path); accumulate in f32.
    h2 = jnp.dot(h1.astype(w2_ref.dtype), w2_ref[...],
                 preferred_element_type=jnp.float32)
    h2 = h2 + ln2_ref[0:1, :]
    h2 = _layer_norm(h2, ln2_ref[1:2, :], ln2_ref[2:3, :])
    h2 = jnp.maximum(h2, 0.0)

    # --- Head: contract feature axes of head[0] and h2 so the per-row result
    #     lands in the lane dimension (lane-dense store, no transpose). -------
    head = head_ref[...]                                   # [8, H2]
    acc = jax.lax.dot_general(
        head, h2, (((1,), (1,)), ((), ())),
        preferred_element_type=jnp.float32)                # [8, tile]
    logits = acc[0:1, :] + head[1:2, 0:1]                  # [1, tile]
    out_ref[0, :, :] = jax.nn.sigmoid(logits).astype(out_ref.dtype)


def _round_up(x, m):
    return ((x + m - 1) // m) * m


def prepare_params(params, feat_dim, compute_dtype=jnp.bfloat16):
    """One-time parameter packing (keep the result and reuse it every call).

    Splits W1 into feature/latent halves and casts the matmul weights to the
    compute dtype (bf16 by default); the small LayerNorm / head parameters
    stay f32 since the kernel does all LN/head math in f32.
    """
    (w1, b1, g1, be1, w2, b2, g2, be2, w3, b3) = params
    half = w2.shape[1]
    w1f = w1[:feat_dim].astype(compute_dtype)
    w1l = w1[feat_dim:].astype(compute_dtype)
    w2c = w2.astype(compute_dtype)
    ln1 = jnp.concatenate([b1, g1, be1], axis=0).astype(jnp.float32)     # [3, H]
    ln2 = jnp.concatenate([b2, g2, be2], axis=0).astype(jnp.float32)     # [3, H2]
    head = jnp.concatenate(
        [w3.T.astype(jnp.float32),
         jnp.broadcast_to(b3.astype(jnp.float32), (1, half)),
         jnp.zeros((6, half), jnp.float32)], axis=0)                     # [8, H2]
    return (w1f, w1l, ln1, w2c, ln2, head)


@functools.partial(jax.jit, static_argnames=("tile_n",))
def logits_predictor_forward(variable_features, variable_latents, packed_params,
                             *, tile_n=2048):
    """Pallas-backed forward pass of LogitsPredictor.

    variable_features: [N, feature_dim]
    variable_latents:  [N, latent_dim]
    packed_params:     output of prepare_params()
    returns:           [N, 1] connection probabilities (f32)

    For best performance feed the activations already in the compute dtype of
    `packed_params` (bf16 by default); otherwise they are cast here.
    """
    (w1f, w1l, ln1, w2, ln2, head) = packed_params

    n, feat_dim = variable_features.shape
    lat_dim = variable_latents.shape[1]

    dtype = w1f.dtype
    xf = variable_features if variable_features.dtype == dtype else variable_features.astype(dtype)
    xl = variable_latents if variable_latents.dtype == dtype else variable_latents.astype(dtype)

    # Tile sizing: lane-dense multiples of 128; single block for small N;
    # >= 2 blocks once N >= 256 so v7x's two TensorCores both get work.
    tile = min(_round_up(max(tile_n, 128), 128), _round_up(n, 128))
    if n >= 256:
        tile = min(tile, _round_up(_round_up(n, 256) // 2, 128))
    n_tiles = pl.cdiv(n, tile)

    def whole(a):
        return pl.BlockSpec(a.shape, lambda i: (0,) * a.ndim)

    out = pl.pallas_call(
        logits_predictor_kernel,
        out_shape=jax.ShapeDtypeStruct((n_tiles, 1, tile), jnp.float32),
        grid=(n_tiles,),
        in_specs=[
            pl.BlockSpec((tile, feat_dim), lambda i: (i, 0)),
            pl.BlockSpec((tile, lat_dim), lambda i: (i, 0)),
            whole(w1f), whole(w1l), whole(ln1),
            whole(w2), whole(ln2), whole(head),
        ],
        out_specs=pl.BlockSpec((1, 1, tile), lambda i: (i, 0, 0)),
        compiler_params=pltpu.CompilerParams(
            dimension_semantics=("parallel",)),
    )(xf, xl, w1f, w1l, ln1, w2, ln2, head)

    # Tail rows of the last (ragged) block are garbage by construction and are
    # discarded here; do NOT add any cross-row reduction that depends on them.
    return out.reshape(n_tiles * tile, 1)[:n]


def init_params(key, input_dim, predictor_hidden_dim=64):
    """Parameter init matching the module's shapes.

    Linear weights stored as [in, out] (transpose of torch's [out, in]).
    LayerNorm: gamma=1, beta=0 (torch defaults). Biases are [1, dim].
    """
    h = predictor_hidden_dim
    h2 = h // 2
    ks = jax.random.split(key, 6)

    def linear(kw, kb, fan_in, fan_out):
        bound = 1.0 / jnp.sqrt(fan_in)
        w = jax.random.uniform(kw, (fan_in, fan_out), jnp.float32, -bound, bound)
        b = jax.random.uniform(kb, (1, fan_out), jnp.float32, -bound, bound)
        return w, b

    w1, b1 = linear(ks[0], ks[1], input_dim, h)
    w2, b2 = linear(ks[2], ks[3], h, h2)
    w3, b3 = linear(ks[4], ks[5], h2, 1)
    g1, be1 = jnp.ones((1, h), jnp.float32), jnp.zeros((1, h), jnp.float32)
    g2, be2 = jnp.ones((1, h2), jnp.float32), jnp.zeros((1, h2), jnp.float32)
    return (w1, b1, g1, be1, w2, b2, g2, be2, w3, b3)


def _ln_ref(x, gamma, beta):
    mean = jnp.mean(x, axis=-1, keepdims=True)
    var = jnp.mean(jnp.square(x - mean), axis=-1, keepdims=True)
    return (x - mean) * jax.lax.rsqrt(var + LN_EPS) * gamma + beta


def reference_forward(variable_features, variable_latents, params):
    # Pure-JAX reference (standard two-pass LayerNorm) for correctness checks.
    (w1, b1, g1, be1, w2, b2, g2, be2, w3, b3) = params
    x = jnp.concatenate([variable_features.astype(jnp.float32),
                         variable_latents.astype(jnp.float32)], axis=1)
    h1 = x @ w1 + b1
    h1 = jnp.maximum(_ln_ref(h1, g1, be1), 0.0)
    h2 = h1 @ w2 + b2
    h2 = jnp.maximum(_ln_ref(h2, g2, be2), 0.0)
    return jax.nn.sigmoid(h2 @ w3 + b3)


if __name__ == "__main__":
    key = jax.random.PRNGKey(0)
    k_feat, k_lat, k_param = jax.random.split(key, 3)

    n_variables = 128          # number of variable nodes
    feature_dim = 32           # variable feature dim
    latent_dim = 16            # variable latent dim
    predictor_hidden_dim = 64  # config.predictor_hidden_dim
    input_dim = feature_dim + latent_dim

    variable_features = jax.random.normal(k_feat, (n_variables, feature_dim), jnp.float32)
    variable_latents = jax.random.normal(k_lat, (n_variables, latent_dim), jnp.float32)
    params = init_params(k_param, input_dim, predictor_hidden_dim)
    ref = reference_forward(variable_features, variable_latents, params)

    # TODO(synk): Dropout is a no-op at inference; training-mode dropout masks
    # are not implemented in the kernel.

    # --- f32 path: tight correctness check ----------------------------------
    packed_f32 = prepare_params(params, feature_dim, compute_dtype=jnp.float32)
    probs = logits_predictor_forward(variable_features, variable_latents, packed_f32)
    jax.block_until_ready(probs)
    assert probs.shape == (n_variables, 1)
    assert jnp.allclose(probs, ref, atol=1e-4, rtol=1e-4)

    # --- bf16 fast path (default): bf16 activations/weights, f32 accum/LN ---
    packed_bf16 = prepare_params(params, feature_dim)   # bf16 compute dtype
    probs_bf16 = logits_predictor_forward(
        variable_features.astype(jnp.bfloat16),
        variable_latents.astype(jnp.bfloat16), packed_bf16)
    jax.block_until_ready(probs_bf16)
    assert probs_bf16.shape == (n_variables, 1)
    assert jnp.allclose(probs_bf16, ref, atol=3e-2)      # probabilities in [0,1]

    # --- ragged / multi-tile path (N not a multiple of the tile, 2 tiles) ---
    n2 = 300
    vf2 = jax.random.normal(jax.random.PRNGKey(1), (n2, feature_dim), jnp.float32)
    vl2 = jax.random.normal(jax.random.PRNGKey(2), (n2, latent_dim), jnp.float32)
    probs2 = logits_predictor_forward(vf2, vl2, packed_f32, tile_n=256)
    jax.block_until_ready(probs2)
    ref2 = reference_forward(vf2, vl2, params)
    assert probs2.shape == (n2, 1)
    assert jnp.allclose(probs2, ref2, atol=1e-4, rtol=1e-4)

    print("KERNEL_OK")
</pallas_src>

<mosaic_0001>
module attributes {stable_mosaic.version = 11 : i64} {
  func.func @logits_predictor_kernel(%arg0: i32, %arg1: memref<128x32xf32, #tpu.memory_space<vmem>>, %arg2: memref<128x16xf32, #tpu.memory_space<vmem>>, %arg3: memref<32x64xf32, #tpu.memory_space<vmem>>, %arg4: memref<16x64xf32, #tpu.memory_space<vmem>>, %arg5: memref<3x64xf32, #tpu.memory_space<vmem>>, %arg6: memref<64x32xf32, #tpu.memory_space<vmem>>, %arg7: memref<3x32xf32, #tpu.memory_space<vmem>>, %arg8: memref<8x32xf32, #tpu.memory_space<vmem>>, %arg9: memref<1x1x128xf32, #tpu.memory_space<vmem>>) attributes {dimension_semantics = [#tpu.dimension_semantics<parallel>], iteration_bounds = array<i64: 1>, scalar_prefetch = 0 : i64, scratch_operands = 0 : i64, tpu.core_type = #tpu.core_type<tc>, window_params = [{transform_indices = @transform_0, window_bounds = array<i64: 128, 32>}, {transform_indices = @transform_1, window_bounds = array<i64: 128, 16>}, {pipeline_mode = #tpu.pipeline_mode<synchronous>, transform_indices = @transform_2, window_bounds = array<i64: 32, 64>}, {pipeline_mode = #tpu.pipeline_mode<synchronous>, transform_indices = @transform_3, window_bounds = array<i64: 16, 64>}, {pipeline_mode = #tpu.pipeline_mode<synchronous>, transform_indices = @transform_4, window_bounds = array<i64: 3, 64>}, {pipeline_mode = #tpu.pipeline_mode<synchronous>, transform_indices = @transform_5, window_bounds = array<i64: 64, 32>}, {pipeline_mode = #tpu.pipeline_mode<synchronous>, transform_indices = @transform_6, window_bounds = array<i64: 3, 32>}, {pipeline_mode = #tpu.pipeline_mode<synchronous>, transform_indices = @transform_7, window_bounds = array<i64: 8, 32>}, {transform_indices = @transform_8, window_bounds = array<i64: 1, 1, 128>}]} {
    %c0 = arith.constant 0 : index
    %c0_0 = arith.constant 0 : index
    %0 = vector.load %arg1[%c0, %c0_0] : memref<128x32xf32, #tpu.memory_space<vmem>>, vector<128x32xf32>
    %c0_1 = arith.constant 0 : index
    %c0_2 = arith.constant 0 : index
    %1 = vector.load %arg3[%c0_1, %c0_2] : memref<32x64xf32, #tpu.memory_space<vmem>>, vector<32x64xf32>
    %cst = arith.constant dense<0.000000e+00> : vector<128x64xf32>
    %2 = tpu.matmul %0, %1, %cst {dimension_numbers = #tpu.dot_dimension_numbers<[1], [0], [0], [1], [0, 0, 1, 1], [], []>} : vector<128x32xf32>, vector<32x64xf32>, vector<128x64xf32> -> vector<128x64xf32>
    %c0_3 = arith.constant 0 : index
    %c0_4 = arith.constant 0 : index
    %3 = vector.load %arg2[%c0_3, %c0_4] : memref<128x16xf32, #tpu.memory_space<vmem>>, vector<128x16xf32>
    %c0_5 = arith.constant 0 : index
    %c0_6 = arith.constant 0 : index
    %4 = vector.load %arg4[%c0_5, %c0_6] : memref<16x64xf32, #tpu.memory_space<vmem>>, vector<16x64xf32>
    %cst_7 = arith.constant dense<0.000000e+00> : vector<128x64xf32>
    %5 = tpu.matmul %3, %4, %cst_7 {dimension_numbers = #tpu.dot_dimension_numbers<[1], [0], [0], [1], [0, 0, 1, 1], [], []>} : vector<128x16xf32>, vector<16x64xf32>, vector<128x64xf32> -> vector<128x64xf32>
    %6 = arith.addf %2, %5 : vector<128x64xf32>
    %c0_8 = arith.constant 0 : index
    %c0_9 = arith.constant 0 : index
    %7 = vector.load %arg5[%c0_8, %c0_9] : memref<3x64xf32, #tpu.memory_space<vmem>>, vector<1x64xf32>
    %8 = vector.broadcast %7 : vector<1x64xf32> to vector<128x64xf32>
    %9 = arith.addf %6, %8 : vector<128x64xf32>
    %c1 = arith.constant 1 : index
    %c0_10 = arith.constant 0 : index
    %10 = vector.load %arg5[%c1, %c0_10] : memref<3x64xf32, #tpu.memory_space<vmem>>, vector<1x64xf32>
    %c2 = arith.constant 2 : index
    %c0_11 = arith.constant 0 : index
    %11 = vector.load %arg5[%c2, %c0_11] : memref<3x64xf32, #tpu.memory_space<vmem>>, vector<1x64xf32>
    %cst_12 = arith.constant dense<0.000000e+00> : vector<128xf32>
    %12 = vector.multi_reduction <add>, %9, %cst_12 [1] : vector<128x64xf32> to vector<128xf32>
    %13 = vector.shape_cast %12 : vector<128xf32> to vector<128x1xf32>
    %cst_13 = arith.constant 6.400000e+01 : f32
    %14 = vector.broadcast %cst_13 : f32 to vector<128x1xf32>
    %15 = arith.divf %13, %14 : vector<128x1xf32>
    %16 = arith.mulf %9, %9 : vector<128x64xf32>
    %cst_14 = arith.constant dense<0.000000e+00> : vector<128xf32>
    %17 = vector.multi_reduction <add>, %16, %cst_14 [1] : vector<128x64xf32> to vector<128xf32>
    %18 = vector.shape_cast %17 : vector<128xf32> to vector<128x1xf32>
    %cst_15 = arith.constant 6.400000e+01 : f32
    %19 = vector.broadcast %cst_15 : f32 to vector<128x1xf32>
    %20 = arith.divf %18, %19 : vector<128x1xf32>
    %21 = arith.mulf %15, %15 : vector<128x1xf32>
    %22 = arith.subf %20, %21 : vector<128x1xf32>
    %cst_16 = arith.constant 0.000000e+00 : f32
    %23 = vector.broadcast %cst_16 : f32 to vector<128x1xf32>
    %24 = arith.maximumf %22, %23 : vector<128x1xf32>
    %cst_17 = arith.constant 9.99999974E-6 : f32
    %25 = vector.broadcast %cst_17 : f32 to vector<128x1xf32>
    %26 = arith.addf %24, %25 : vector<128x1xf32>
    %27 = math.rsqrt %26 : vector<128x1xf32>
    %28 = vector.broadcast %15 : vector<128x1xf32> to vector<128x64xf32>
    %29 = arith.subf %9, %28 : vector<128x64xf32>
    %30 = vector.broadcast %27 : vector<128x1xf32> to vector<128x64xf32>
    %31 = arith.mulf %29, %30 : vector<128x64xf32>
    %32 = vector.broadcast %10 : vector<1x64xf32> to vector<128x64xf32>
    %33 = arith.mulf %31, %32 : vector<128x64xf32>
    %34 = vector.broadcast %11 : vector<1x64xf32> to vector<128x64xf32>
    %35 = arith.addf %33, %34 : vector<128x64xf32>
    %cst_18 = arith.constant 0.000000e+00 : f32
    %36 = vector.broadcast %cst_18 : f32 to vector<128x64xf32>
    %37 = arith.maximumf %35, %36 : vector<128x64xf32>
    %c0_19 = arith.constant 0 : index
    %c0_20 = arith.constant 0 : index
    %38 = vector.load %arg6[%c0_19, %c0_20] : memref<64x32xf32, #tpu.memory_space<vmem>>, vector<64x32xf32>
    %cst_21 = arith.constant dense<0.000000e+00> : vector<128x32xf32>
    %39 = tpu.matmul %37, %38, %cst_21 {dimension_numbers = #tpu.dot_dimension_numbers<[1], [0], [0], [1], [0, 0, 1, 1], [], []>} : vector<128x64xf32>, vector<64x32xf32>, vector<128x32xf32> -> vector<128x32xf32>
    %c0_22 = arith.constant 0 : index
    %c0_23 = arith.constant 0 : index
    %40 = vector.load %arg7[%c0_22, %c0_23] : memref<3x32xf32, #tpu.memory_space<vmem>>, vector<1x32xf32>
    %41 = vector.broadcast %40 : vector<1x32xf32> to vector<128x32xf32>
    %42 = arith.addf %39, %41 : vector<128x32xf32>
    %c1_24 = arith.constant 1 : index
    %c0_25 = arith.constant 0 : index
    %43 = vector.load %arg7[%c1_24, %c0_25] : memref<3x32xf32, #tpu.memory_space<vmem>>, vector<1x32xf32>
    %c2_26 = arith.constant 2 : index
    %c0_27 = arith.constant 0 : index
    %44 = vector.load %arg7[%c2_26, %c0_27] : memref<3x32xf32, #tpu.memory_space<vmem>>, vector<1x32xf32>
    %cst_28 = arith.constant dense<0.000000e+00> : vector<128xf32>
    %45 = vector.multi_reduction <add>, %42, %cst_28 [1] : vector<128x32xf32> to vector<128xf32>
    %46 = vector.shape_cast %45 : vector<128xf32> to vector<128x1xf32>
    %cst_29 = arith.constant 3.200000e+01 : f32
    %47 = vector.broadcast %cst_29 : f32 to vector<128x1xf32>
    %48 = arith.divf %46, %47 : vector<128x1xf32>
    %49 = arith.mulf %42, %42 : vector<128x32xf32>
    %cst_30 = arith.constant dense<0.000000e+00> : vector<128xf32>
    %50 = vector.multi_reduction <add>, %49, %cst_30 [1] : vector<128x32xf32> to vector<128xf32>
    %51 = vector.shape_cast %50 : vector<128xf32> to vector<128x1xf32>
    %cst_31 = arith.constant 3.200000e+01 : f32
    %52 = vector.broadcast %cst_31 : f32 to vector<128x1xf32>
    %53 = arith.divf %51, %52 : vector<128x1xf32>
    %54 = arith.mulf %48, %48 : vector<128x1xf32>
    %55 = arith.subf %53, %54 : vector<128x1xf32>
    %cst_32 = arith.constant 0.000000e+00 : f32
    %56 = vector.broadcast %cst_32 : f32 to vector<128x1xf32>
    %57 = arith.maximumf %55, %56 : vector<128x1xf32>
    %cst_33 = arith.constant 9.99999974E-6 : f32
    %58 = vector.broadcast %cst_33 : f32 to vector<128x1xf32>
    %59 = arith.addf %57, %58 : vector<128x1xf32>
    %60 = math.rsqrt %59 : vector<128x1xf32>
    %61 = vector.broadcast %48 : vector<128x1xf32> to vector<128x32xf32>
    %62 = arith.subf %42, %61 : vector<128x32xf32>
    %63 = vector.broadcast %60 : vector<128x1xf32> to vector<128x32xf32>
    %64 = arith.mulf %62, %63 : vector<128x32xf32>
    %65 = vector.broadcast %43 : vector<1x32xf32> to vector<128x32xf32>
    %66 = arith.mulf %64, %65 : vector<128x32xf32>
    %67 = vector.broadcast %44 : vector<1x32xf32> to vector<128x32xf32>
    %68 = arith.addf %66, %67 : vector<128x32xf32>
    %cst_34 = arith.constant 0.000000e+00 : f32
    %69 = vector.broadcast %cst_34 : f32 to vector<128x32xf32>
    %70 = arith.maximumf %68, %69 : vector<128x32xf32>
    %c0_35 = arith.constant 0 : index
    %c0_36 = arith.constant 0 : index
    %71 = vector.load %arg8[%c0_35, %c0_36] : memref<8x32xf32, #tpu.memory_space<vmem>>, vector<8x32xf32>
    %cst_37 = arith.constant dense<0.000000e+00> : vector<8x128xf32>
    %72 = tpu.matmul %71, %70, %cst_37 {dimension_numbers = #tpu.dot_dimension_numbers<[1], [1], [0], [0], [0, 0, 1, 0], [], []>} : vector<8x32xf32>, vector<128x32xf32>, vector<8x128xf32> -> vector<8x128xf32>
    %73 = vector.extract_strided_slice %72 {offsets = [0, 0], sizes = [1, 128], strides = [1, 1]} : vector<8x128xf32> to vector<1x128xf32>
    %74 = vector.extract_strided_slice %71 {offsets = [1, 0], sizes = [1, 1], strides = [1, 1]} : vector<8x32xf32> to vector<1x1xf32>
    %75 = vector.broadcast %74 : vector<1x1xf32> to vector<1x128xf32>
    %76 = arith.addf %73, %75 : vector<1x128xf32>
    %77 = arith.negf %76 : vector<1x128xf32>
    %78 = math.exp %77 : vector<1x128xf32>
    %cst_38 = arith.constant 1.000000e+00 : f32
    %79 = vector.broadcast %cst_38 : f32 to vector<1x128xf32>
    %80 = arith.addf %79, %78 : vector<1x128xf32>
    %81 = arith.divf %79, %80 : vector<1x128xf32>
    %c0_39 = arith.constant 0 : index
    %c0_40 = arith.constant 0 : index
    %c0_41 = arith.constant 0 : index
    %82 = vector.load %arg9[%c0_39, %c0_40, %c0_41] : memref<1x1x128xf32, #tpu.memory_space<vmem>>, vector<1x1x128xf32>
    %83 = vector.shape_cast %82 : vector<1x1x128xf32> to vector<1x128xf32>
    %84 = vector.shape_cast %81 : vector<1x128xf32> to vector<1x1x128xf32>
    tpu.vector_store %arg9[%c0_39, %c0_40, %c0_41], %84 {strides = array<i32>} : memref<1x1x128xf32, #tpu.memory_space<vmem>>, vector<1x1x128xf32>,
    return
  }
  func.func @transform_0(%arg0: i32) -> (i32, i32) {
    %c0_i32 = arith.constant 0 : i32
    %c0_i32_0 = arith.constant 0 : i32
    return %arg0, %c0_i32 : i32, i32
  }
  func.func @transform_1(%arg0: i32) -> (i32, i32) {
    %c0_i32 = arith.constant 0 : i32
    %c0_i32_0 = arith.constant 0 : i32
    return %arg0, %c0_i32 : i32, i32
  }
  func.func @transform_2(%arg0: i32) -> (i32, i32) {
    %c0_i32 = arith.constant 0 : i32
    %c0_i32_0 = arith.constant 0 : i32
    %c0_i32_1 = arith.constant 0 : i32
    return %c0_i32, %c0_i32_0 : i32, i32
  }
  func.func @transform_3(%arg0: i32) -> (i32, i32) {
    %c0_i32 = arith.constant 0 : i32
    %c0_i32_0 = arith.constant 0 : i32
    %c0_i32_1 = arith.constant 0 : i32
    return %c0_i32, %c0_i32_0 : i32, i32
  }
  func.func @transform_4(%arg0: i32) -> (i32, i32) {
    %c0_i32 = arith.constant 0 : i32
    %c0_i32_0 = arith.constant 0 : i32
    %c0_i32_1 = arith.constant 0 : i32
    return %c0_i32, %c0_i32_0 : i32, i32
  }
  func.func @transform_5(%arg0: i32) -> (i32, i32) {
    %c0_i32 = arith.constant 0 : i32
    %c0_i32_0 = arith.constant 0 : i32
    %c0_i32_1 = arith.constant 0 : i32
    return %c0_i32, %c0_i32_0 : i32, i32
  }
  func.func @transform_6(%arg0: i32) -> (i32, i32) {
    %c0_i32 = arith.constant 0 : i32
    %c0_i32_0 = arith.constant 0 : i32
    %c0_i32_1 = arith.constant 0 : i32
    return %c0_i32, %c0_i32_0 : i32, i32
  }
  func.func @transform_7(%arg0: i32) -> (i32, i32) {
    %c0_i32 = arith.constant 0 : i32
    %c0_i32_0 = arith.constant 0 : i32
    %c0_i32_1 = arith.constant 0 : i32
    return %c0_i32, %c0_i32_0 : i32, i32
  }
  func.func @transform_8(%arg0: i32) -> (i32, i32, i32) {
    %c0_i32 = arith.constant 0 : i32
    %c0_i32_0 = arith.constant 0 : i32
    %c0_i32_1 = arith.constant 0 : i32
    return %arg0, %c0_i32, %c0_i32_0 : i32, i32, i32
  }
}

</mosaic_0001>

<bundles_post_ra>
// kernel: logits_predictor_forward.1
= control target key start
LH: loop header
LB: loop body
LE: loop exit
PB: predicated region body
PF: predicated region fallthrough
CT: control target
= control target key end

     0   :  { %vm68_vm0 = vcmask 130048   ;;  %s2729_s0 = inlined_call_operand.vmem [shape: f32[128,32], index: 0, kind: input, shape index: {}]   ;;  %s2730_s1 = inlined_call_operand.vmem [shape: f32[128,16], index: 1, kind: input, shape index: {}]   ;;  %s2731_s2 = inlined_call_operand.vmem [shape: f32[32,64], index: 2, kind: input, shape index: {}]   ;;  %s2732_s3 = inlined_call_operand.vmem [shape: f32[16,64], index: 3, kind: input, shape index: {}]   ;;  %s2733_s4 = inlined_call_operand.vmem [shape: f32[3,64], index: 4, kind: input, shape index: {}]   ;;  %s2734_s5 = inlined_call_operand.vmem [shape: f32[64,32], index: 5, kind: input, shape index: {}]   ;;  %s2735_s6 = inlined_call_operand.vmem [shape: f32[3,32], index: 6, kind: input, shape index: {}]   ;;  %s2736_s7 = inlined_call_operand.vmem [shape: f32[8,32], index: 7, kind: input, shape index: {}]   ;;  %s2737_s8 = inlined_call_operand.hbm [shape: f32[1,1,128], index: 8, kind: output, shape index: {}]  }
   0x1   :  { %v66_v0 = vld [vmem:[%s2732_s3] sm:$0xff]  ;;  %v67_v1 = vld [vmem:[%s2732_s3 + $0x8] sm:$0xff]  ;;  %v48_v8 = vld [vmem:[%s2731_s2 + $0x10] sm:$0xff] }
   0x2   :  { %v50_v2 = vld [vmem:[%s2730_s1] sm:$0xff]  ;;  %v1749_v3 = vpack.c.bf16 %v67_v1, %v66_v0  ;;  %v47_v5 = vld [vmem:[%s2731_s2 + $0x8] sm:$0xff]  ;;  %v52_v9 = vld [vmem:[%s2730_s1 + $0x10] sm:$0xff] }
   0x3   :  { %1618 = vmatprep.mubr.msk.f32.mxu0 %vm68_vm0, %v50_v2  ;;  %v46_v4 = vld [vmem:[%s2731_s2] sm:$0xff]  ;;  %v51_v7 = vld [vmem:[%s2730_s1 + $0x8] sm:$0xff]  ;;  %v49_v10 = vld [vmem:[%s2731_s2 + $0x18] sm:$0xff] }
   0x4   :  { %v1753_v6 = vpack.c.bf16 %v47_v5, %v46_v4  ;;  %1750 = vmatprep.subr.bf16.mxu0 %v1749_v3  ;;  %v1757_v11 = vpack.c.bf16 %v49_v10, %v48_v8  ;;  %v53_v12 = vld [vmem:[%s2730_s1 + $0x18] sm:$0xff]  ;;  %v54_v13 = vld [vmem:[%s2730_s1 + $0x20] sm:$0xff]  ;;  %v55_v14 = vld [vmem:[%s2730_s1 + $0x28] sm:$0xff] }
   0x5   :  { %1752 = vmatpush3.bf16.msra.mxu0 %v1749_v3 }
   0x6   :  { %1754 = vmatprep.subr.bf16.mxu0 %v1753_v6 }
   0x8   :  { %1619 = vmatmul.mubr.msk.f32.vlgmr.msra.gmra.mrb[0].mxu0 %vm68_vm0, %v51_v7 }
   0x9   :  { %1756 = vmatpush3.bf16.msra.mxu0 %v1753_v6  ;;  %1621 = vmatprep.mubr.msk.f32.mxu0 %vm68_vm0, %v52_v9 }
   0xa   :  { %1758 = vmatprep.subr.bf16.mxu0 %v1757_v11 }
   0xc   :  { %1622 = vmatmul.mubr.msk.f32.gmra.mrb[2].mxu0 %vm68_vm0, %v53_v12 }
   0xd   :  { %1624 = vmatprep.mubr.msk.f32.mxu0 %vm68_vm0, %v54_v13  ;;  %1760 = vmatpush3.bf16.msra.mxu0 %v1757_v11 }
   0xe   :  { %13 = vsyncpa [#allocation3], 0  ;;  %v56_v15 = vld [vmem:[%s2730_s1 + $0x30] sm:$0xff]  ;;  %v57_v16 = vld [vmem:[%s2730_s1 + $0x38] sm:$0xff]  ;;  %vm262_vm1 = vcmask 261120   ;;  %vm479_vm2 = vcmask 523264  }
   0xf   :  { %v58_v17 = vld [vmem:[%s2730_s1 + $0x40] sm:$0xff]  ;;  %v59_v18 = vld [vmem:[%s2730_s1 + $0x48] sm:$0xff]  ;;  %v60_v19 = vld [vmem:[%s2730_s1 + $0x50] sm:$0xff]  ;;  %vm1924_vm3 = vmmov 0  }
  0x10   :  { %1625 = vmatmul.mubr.msk.f32.gmra.mrb[4].mxu0 %vm68_vm0, %v55_v14  ;;  %v61_v20 = vld [vmem:[%s2730_s1 + $0x58] sm:$0xff]  ;;  %v62_v21 = vld [vmem:[%s2730_s1 + $0x60] sm:$0xff]  ;;  %v63_v22 = vld [vmem:[%s2730_s1 + $0x68] sm:$0xff] }
  0x11   :  { %1627 = vmatprep.mubr.msk.f32.mxu0 %vm68_vm0, %v56_v15  ;;  %v64_v23 = vld [vmem:[%s2730_s1 + $0x70] sm:$0xff]  ;;  %v65_v24 = vld [vmem:[%s2730_s1 + $0x78] sm:$0xff]  ;;  %v30_v25 = vld [vmem:[%s2729_s0] sm:$0xff] }
  0x12   :  { %v31_v26 = vld [vmem:[%s2729_s0 + $0x8] sm:$0xff]  ;;  %v32_v27 = vld [vmem:[%s2729_s0 + $0x10] sm:$0xff]  ;;  %v33_v28 = vld [vmem:[%s2729_s0 + $0x18] sm:$0xff] }
  0x13   :  { %v34_v29 = vld [vmem:[%s2729_s0 + $0x20] sm:$0xff]  ;;  %v35_v30 = vld [vmem:[%s2729_s0 + $0x28] sm:$0xff]  ;;  %v36_v31 = vld [vmem:[%s2729_s0 + $0x30] sm:$0xff] }
  0x14   :  { %1628 = vmatmul.mubr.msk.f32.gmra.mrb[6].mxu0 %vm68_vm0, %v57_v16  ;;  %v37_v32 = vld [vmem:[%s2729_s0 + $0x38] sm:$0xff]  ;;  %v38_v33 = vld [vmem:[%s2729_s0 + $0x40] sm:$0xff]  ;;  %v39_v34 = vld [vmem:[%s2729_s0 + $0x48] sm:$0xff] }
  0x15   :  { %1630 = vmatprep.mubr.msk.f32.mxu0 %vm68_vm0, %v58_v17  ;;  %v40_v35 = vld [vmem:[%s2729_s0 + $0x50] sm:$0xff]  ;;  %v41_v36 = vld [vmem:[%s2729_s0 + $0x58] sm:$0xff]  ;;  %v42_v37 = vld [vmem:[%s2729_s0 + $0x60] sm:$0xff] }
  0x16   :  { %v43_v38 = vld [vmem:[%s2729_s0 + $0x68] sm:$0xff]  ;;  %v44_v39 = vld [vmem:[%s2729_s0 + $0x70] sm:$0xff]  ;;  %v45_v40 = vld [vmem:[%s2729_s0 + $0x78] sm:$0xff] }
  0x17   :  { %v2122_v41 = vld [vmem:[%s2733_s4] ss:$0 sm:$0xff]  ;;  %vm2604_vm4 = vmpackc.low %vm262_vm1, %vm262_vm1 }
  0x18   :  { %1631 = vmatmul.mubr.msk.f32.gmra.mrb[8].mxu0 %vm68_vm0, %v59_v18 }
  0x19   :  { %1633 = vmatprep.mubr.msk.f32.mxu0 %vm68_vm0, %v60_v19 }
  0x1c   :  { %1634 = vmatmul.mubr.msk.f32.gmra.mrb[10].mxu0 %vm68_vm0, %v61_v20 }
  0x1d   :  { %1636 = vmatprep.mubr.msk.f32.mxu0 %vm68_vm0, %v62_v21 }
  0x20   :  { %1637 = vmatmul.mubr.msk.f32.gmra.mrb[12].mxu0 %vm68_vm0, %v63_v22 }
  0x21   :  { %1639 = vmatprep.mubr.msk.f32.mxu0 %vm68_vm0, %v64_v23 }
  0x24   :  { %1640 = vmatmul.mubr.msk.f32.gmra.mrb[14].mxu0 %vm68_vm0, %v65_v24 }
  0x25   :  { %1650 = vmatprep.mubr.msk.f32.mxu0 %vm262_vm1, %v30_v25 }
  0x28   :  { %1651 = vmatmul.mubr.msk.f32.vlgmr.msra.gmra.mrb[0].mxu0 %vm262_vm1, %v31_v26 }
  0x29   :  { %1653 = vmatprep.mubr.msk.f32.mxu0 %vm262_vm1, %v32_v27 }
  0x2c   :  { %1654 = vmatmul.mubr.msk.f32.gmra.mrb[2].mxu0 %vm262_vm1, %v33_v28  ;;  %v793_v28 = vld [vmem:[%s2734_s5] sm:$0xff] }
  0x2d   :  { %1656 = vmatprep.mubr.msk.f32.mxu0 %vm262_vm1, %v34_v29  ;;  %v794_v29 = vld [vmem:[%s2734_s5 + $0x8] sm:$0xff] }
  0x30   :  { %1657 = vmatmul.mubr.msk.f32.gmra.mrb[4].mxu0 %vm262_vm1, %v35_v30  ;;  %v1761_v30 = vpack.c.bf16 %v794_v29, %v793_v28 }
  0x31   :  { %1659 = vmatprep.mubr.msk.f32.mxu0 %vm262_vm1, %v36_v31 }
  0x32   :  { %1762 = vmatprep.subr.bf16.mxu1 %v1761_v30 }
  0x33   :  { %1764 = vmatpush3.bf16.msra.mxu1 %v1761_v30 }
  0x34   :  { %1660 = vmatmul.mubr.msk.f32.gmra.mrb[6].mxu0 %vm262_vm1, %v37_v32 }
  0x35   :  { %1662 = vmatprep.mubr.msk.f32.mxu0 %vm262_vm1, %v38_v33 }
  0x38   :  { %1663 = vmatmul.mubr.msk.f32.gmra.mrb[8].mxu0 %vm262_vm1, %v39_v34 }
  0x39   :  { %1665 = vmatprep.mubr.msk.f32.mxu0 %vm262_vm1, %v40_v35  ;;  %v795_v35 = vld [vmem:[%s2734_s5 + $0x10] sm:$0xff] }
  0x3c   :  { %1666 = vmatmul.mubr.msk.f32.gmra.mrb[10].mxu0 %vm262_vm1, %v41_v36  ;;  %v796_v36 = vld [vmem:[%s2734_s5 + $0x18] sm:$0xff] }
  0x3d   :  { %1668 = vmatprep.mubr.msk.f32.mxu0 %vm262_vm1, %v42_v37  ;;  %v1765_v37 = vpack.c.bf16 %v796_v36, %v795_v35 }
  0x3f   :  { %1766 = vmatprep.subr.bf16.mxu1 %v1765_v37 }
  0x40   :  { %1669 = vmatmul.mubr.msk.f32.gmra.mrb[12].mxu0 %vm262_vm1, %v43_v38  ;;  %1768 = vmatpush3.bf16.msra.mxu1 %v1765_v37 }
  0x41   :  { %1671 = vmatprep.mubr.msk.f32.mxu0 %vm262_vm1, %v44_v39 }
  0x44   :  { %1672 = vmatmul.mubr.msk.f32.gmra.mrb[14].mxu0 %vm262_vm1, %v45_v40 }
  0xfb   :  { %v1652_v42 = vpop.f32.mrb[0].mxu0 }
  0xfc   :  { %v377_v43 = vpop.f32.mrb[1].mxu0  ;;  %v2125_v44 = vadd.f32 %v1652_v42, %v2122_v41 }
  0xfd   :  { %v2128_v45 = vadd.f32 %v2122_v41, %v377_v43  ;;  %v797_v43 = vld [vmem:[%s2734_s5 + $0x20] sm:$0xff] }
  0xfe   :  { %v546_v51 = vmul.f32 %v2125_v44, %v2125_v44  ;;  %v483_v54 = vsel %vm479_vm2, %v2125_v44, 0.0 }
  0xff   :  { %v1655_v46 = vpop.f32.mrb[2].mxu0  ;;  %v480_v47 = vsel %vm479_vm2, %v2128_v45, 0.0  ;;  %v545_v48 = vmul.f32 %v2128_v45, %v2128_v45 }
 0x100   :  { %481 = vadd.xlane.f32.xlu0 %v480_v47  ;;  %v387_v49 = vpop.f32.mrb[3].mxu0  ;;  %v2143_v56 = vadd.f32 %v1655_v46, %v2122_v41  ;;  %v564_v57 = vsel %vm479_vm2, %v546_v51, 0.0  ;;  %v798_v46 = vld [vmem:[%s2734_s5 + $0x28] sm:$0xff] }
 0x101   :  { %v561_v50 = vsel %vm479_vm2, %v545_v48, 0.0  ;;  %v2138_v52 = vadd.f32 %v2122_v41, %v387_v49  ;;  %v1769_v47 = vpack.c.bf16 %v798_v46, %v797_v43 }
 0x102   :  { %562 = vadd.xlane.f32.xlu1 %v561_v50  ;;  %v489_v62 = vsel %vm479_vm2, %v2143_v56, 0.0  ;;  %v548_v63 = vmul.f32 %v2143_v56, %v2143_v56 }
 0x103   :  { %v1658_v53 = vpop.f32.mrb[4].mxu0  ;;  %v486_v59 = vsel %vm479_vm2, %v2138_v52, 0.0  ;;  %v547_v60 = vmul.f32 %v2138_v52, %v2138_v52  ;;  %1770 = vmatprep.subr.bf16.mxu1 %v1769_v47 }
 0x104   :  { %484 = vadd.xlane.f32.xlu0 %v483_v54  ;;  %v397_v55 = vpop.f32.mrb[5].mxu0  ;;  %v2159_v4 = vadd.f32 %v1658_v53, %v2122_v41  ;;  %v570_v5 = vsel %vm479_vm2, %v548_v63, 0.0  ;;  %1772 = vmatpush3.bf16.msra.mxu1 %v1769_v47  ;;  %v799_v53 = vld [vmem:[%s2734_s5 + $0x30] sm:$0xff]  ;;  %v800_v54 = vld [vmem:[%s2734_s5 + $0x38] sm:$0xff] }
 0x105   :  { %v2155_v0 = vadd.f32 %v2122_v41, %v397_v55  ;;  %v567_v2 = vsel %vm479_vm2, %v547_v60, 0.0  ;;  %v1773_v55 = vpack.c.bf16 %v800_v54, %v799_v53 }
 0x106   :  { %565 = vadd.xlane.f32.xlu1 %v564_v57  ;;  %v495_v10 = vsel %vm479_vm2, %v2159_v4, 0.0  ;;  %v550_v11 = vmul.f32 %v2159_v4, %v2159_v4 }
 0x107   :  { %v1661_v58 = vpop.f32.mrb[6].mxu0  ;;  %v492_v7 = vsel %vm479_vm2, %v2155_v0, 0.0  ;;  %v549_v8 = vmul.f32 %v2155_v0, %v2155_v0  ;;  %1774 = vmatprep.subr.bf16.mxu1 %v1773_v55 }
 0x108   :  { %487 = vadd.xlane.f32.xlu0 %v486_v59  ;;  %v407_v61 = vpop.f32.mrb[7].mxu0  ;;  %v2175_v16 = vadd.f32 %v1661_v58, %v2122_v41  ;;  %v576_v17 = vsel %vm479_vm2, %v550_v11, 0.0  ;;  %1776 = vmatpush3.bf16.msra.mxu1 %v1773_v55 }
 0x109   :  { %v2171_v12 = vadd.f32 %v2122_v41, %v407_v61  ;;  %v573_v14 = vsel %vm479_vm2, %v549_v8, 0.0 }
 0x10a   :  { %490 = vadd.xlane.f32.xlu1 %v489_v62  ;;  %v501_v22 = vsel %vm479_vm2, %v2175_v16, 0.0  ;;  %v552_v23 = vmul.f32 %v2175_v16, %v2175_v16 }
 0x10b   :  { %v1664_v1 = vpop.f32.mrb[8].mxu0  ;;  %v498_v19 = vsel %vm479_vm2, %v2171_v12, 0.0  ;;  %v551_v20 = vmul.f32 %v2171_v12, %v2171_v12 }
 0x10c   :  { %568 = vadd.xlane.f32.xlu0 %v567_v2  ;;  %v417_v3 = vpop.f32.mrb[9].mxu0  ;;  %v2193_v26 = vadd.f32 %v1664_v1, %v2122_v41  ;;  %v582_v27 = vsel %vm479_vm2, %v552_v23, 0.0 }
 0x10d   :  { %v2189_v24 = vadd.f32 %v2122_v41, %v417_v3  ;;  %v579_v25 = vsel %vm479_vm2, %v551_v20, 0.0 }
 0x10e   :  { %571 = vadd.xlane.f32.xlu1 %v570_v5  ;;  %v507_v33 = vsel %vm479_vm2, %v2193_v26, 0.0  ;;  %v554_v34 = vmul.f32 %v2193_v26, %v2193_v26 }
 0x10f   :  { %v1667_v6 = vpop.f32.mrb[10].mxu0  ;;  %v504_v31 = vsel %vm479_vm2, %v2189_v24, 0.0  ;;  %v553_v32 = vmul.f32 %v2189_v24, %v2189_v24 }
 0x110   :  { %493 = vadd.xlane.f32.xlu0 %v492_v7  ;;  %v427_v9 = vpop.f32.mrb[11].mxu0  ;;  %v2221_v40 = vadd.f32 %v1667_v6, %v2122_v41  ;;  %v588_v42 = vsel %vm479_vm2, %v554_v34, 0.0 }
 0x111   :  { %v2217_v38 = vadd.f32 %v2122_v41, %v427_v9  ;;  %v585_v39 = vsel %vm479_vm2, %v553_v32, 0.0 }
 0x112   :  { %496 = vadd.xlane.f32.xlu1 %v495_v10  ;;  %v513_v50 = vsel %vm479_vm2, %v2221_v40, 0.0  ;;  %v556_v51 = vmul.f32 %v2221_v40, %v2221_v40 }
 0x113   :  { %v1670_v13 = vpop.f32.mrb[12].mxu0  ;;  %v510_v48 = vsel %vm479_vm2, %v2217_v38, 0.0  ;;  %v555_v49 = vmul.f32 %v2217_v38, %v2217_v38 }
 0x114   :  { %574 = vadd.xlane.f32.xlu0 %v573_v14  ;;  %v437_v15 = vpop.f32.mrb[13].mxu0  ;;  %v2249_v59 = vadd.f32 %v1670_v13, %v2122_v41  ;;  %v594_v60 = vsel %vm479_vm2, %v556_v51, 0.0 }
 0x115   :  { %v2245_v57 = vadd.f32 %v2122_v41, %v437_v15  ;;  %v591_v58 = vsel %vm479_vm2, %v555_v49, 0.0 }
 0x116   :  { %577 = vadd.xlane.f32.xlu1 %v576_v17  ;;  %v519_v63 = vsel %vm479_vm2, %v2249_v59, 0.0  ;;  %v558_v1 = vmul.f32 %v2249_v59, %v2249_v59 }
 0x117   :  { %v2178_v18 = vpop.f32.mrb[14].mxu0  ;;  %v516_v61 = vsel %vm479_vm2, %v2245_v57, 0.0  ;;  %v557_v62 = vmul.f32 %v2245_v57, %v2245_v57 }
 0x118   :  { %499 = vadd.xlane.f32.xlu0 %v498_v19  ;;  %v447_v21 = vpop.f32.mrb[15].mxu0  ;;  %v2266_v5 = vadd.f32 %v2178_v18, %v2122_v41  ;;  %v600_v6 = vsel %vm479_vm2, %v558_v1, 0.0 }
 0x119   :  { %v2261_v2 = vadd.f32 %v2122_v41, %v447_v21  ;;  %v597_v3 = vsel %vm479_vm2, %v557_v62, 0.0 }
 0x11a   :  { %502 = vadd.xlane.f32.xlu1 %v501_v22  ;;  %v525_v9 = vsel %vm479_vm2, %v2266_v5, 0.0  ;;  %v560_v10 = vmul.f32 %v2266_v5, %v2266_v5 }
 0x11b   :  { %v522_v7 = vsel %vm479_vm2, %v2261_v2, 0.0  ;;  %v559_v8 = vmul.f32 %v2261_v2, %v2261_v2 }
 0x11c   :  { %580 = vadd.xlane.f32.xlu0 %v579_v25  ;;  %v606_v11 = vsel %vm479_vm2, %v560_v10, 0.0 }
 0x11d   :  { %v603_v41 = vsel %vm479_vm2, %v559_v8, 0.0 }
 0x11e   :  { %583 = vadd.xlane.f32.xlu1 %v582_v27 }
 0x120   :  { %505 = vadd.xlane.f32.xlu0 %v504_v31 }
 0x122   :  { %508 = vadd.xlane.f32.xlu1 %v507_v33 }
 0x124   :  { %586 = vadd.xlane.f32.xlu0 %v585_v39 }
 0x126   :  { %589 = vadd.xlane.f32.xlu1 %v588_v42 }
 0x128   :  { %511 = vadd.xlane.f32.xlu0 %v510_v48 }
 0x12a   :  { %514 = vadd.xlane.f32.xlu1 %v513_v50 }
 0x12c   :  { %592 = vadd.xlane.f32.xlu0 %v591_v58 }
 0x12e   :  { %595 = vadd.xlane.f32.xlu1 %v594_v60 }
 0x130   :  { %517 = vadd.xlane.f32.xlu0 %v516_v61 }
 0x132   :  { %520 = vadd.xlane.f32.xlu1 %v519_v63 }
 0x134   :  { %598 = vadd.xlane.f32.xlu0 %v597_v3 }
 0x136   :  { %601 = vadd.xlane.f32.xlu1 %v600_v6  ;;  %v2297_v6 = vld [vmem:[%s2733_s4 + $0x1] ss:$0 sm:$0xff] }
 0x138   :  { %523 = vadd.xlane.f32.xlu0 %v522_v7 }
 0x13a   :  { %526 = vadd.xlane.f32.xlu1 %v525_v9 }
 0x13c   :  { %604 = vadd.xlane.f32.xlu0 %v603_v41  ;;  %v2304_v41 = vld [vmem:[%s2733_s4 + $0x2] ss:$0 sm:$0xff] }
 0x13e   :  { %607 = vadd.xlane.f32.xlu1 %v606_v11 }
 0x18d   :  { %v482_v13 = vpop.xlane.xlu0 %481 }
 0x18e   :  { %v529_v14 = vmul.f32 0.015625, %v482_v13 }
 0x18f   :  { %v563_v15 = vpop.xlane.xlu1 %562 }
 0x190   :  { %v625_v17 = vmul.f32 %v529_v14, %v529_v14  ;;  %v609_v18 = vmul.f32 0.015625, %v563_v15  ;;  %v705_v58 = vsub.f32 %v2128_v45, %v529_v14 }
 0x191   :  { %v485_v19 = vpop.xlane.xlu0 %484 }
 0x192   :  { %v641_v20 = vsub.f32 %v609_v18, %v625_v17  ;;  %v530_v21 = vmul.f32 0.015625, %v485_v19 }
 0x193   :  { %v566_v22 = vpop.xlane.xlu1 %565 }
 0x194   :  { %v657_v23 = vmax.f32 %v641_v20, 0.0  ;;  %v626_v25 = vmul.f32 %v530_v21, %v530_v21  ;;  %v610_v27 = vmul.f32 0.015625, %v566_v22  ;;  %v706_v11 = vsub.f32 %v2125_v44, %v530_v21 }
 0x195   :  { %v488_v28 = vpop.xlane.xlu0 %487 }
 0x196   :  { %v673_v29 = vadd.f32 1e-05, %v657_v23  ;;  %v642_v30 = vsub.f32 %v610_v27, %v626_v25  ;;  %v2279_v31 = vmul.f32 0.015625, %v488_v28 }
 0x197   :  { %v491_v32 = vpop.xlane.xlu1 %490 }
 0x198   :  { %1831 = vrsqrt.f32 %v673_v29  ;;  %v658_v33 = vmax.f32 %v642_v30, 0.0  ;;  %v2281_v34 = vmul.f32 0.015625, %v491_v32  ;;  %v627_v37 = vmul.f32 %v2279_v31, %v2279_v31 }
 0x199   :  { %v569_v35 = vpop.xlane.xlu0 %568 }
 0x19a   :  { %v674_v36 = vadd.f32 1e-05, %v658_v33  ;;  %v611_v39 = vmul.f32 0.015625, %v569_v35  ;;  %v628_v43 = vmul.f32 %v2281_v34, %v2281_v34  ;;  %v707_v35 = vsub.f32 %v2138_v52, %v2279_v31 }
 0x19b   :  { %v572_v42 = vpop.xlane.xlu1 %571 }
 0x19c   :  { %1833 = vrsqrt.f32 %v674_v36  ;;  %v643_v46 = vsub.f32 %v611_v39, %v627_v37  ;;  %v612_v47 = vmul.f32 0.015625, %v572_v42 }
 0x19d   :  { %v494_v48 = vpop.xlane.xlu0 %493 }
 0x19e   :  { %v659_v49 = vmax.f32 %v643_v46, 0.0  ;;  %v644_v50 = vsub.f32 %v612_v47, %v628_v43  ;;  %v2287_v51 = vmul.f32 0.015625, %v494_v48  ;;  %v708_v47 = vsub.f32 %v2143_v56, %v2281_v34 }
 0x19f   :  { %v497_v53 = vpop.xlane.xlu1 %496 }
 0x1a0   :  { %v675_v54 = vadd.f32 1e-05, %v659_v49  ;;  %v660_v55 = vmax.f32 %v644_v50, 0.0  ;;  %v2290_v60 = vmul.f32 0.015625, %v497_v53  ;;  %v629_v1 = vmul.f32 %v2287_v51, %v2287_v51 }
 0x1a1   :  { %v575_v61 = vpop.xlane.xlu0 %574 }
 0x1a2   :  { %v1832_v62 = vpop.eup %1831  ;;  %1835 = vrsqrt.f32 %v675_v54  ;;  %v676_v63 = vadd.f32 1e-05, %v660_v55  ;;  %v613_v3 = vmul.f32 0.015625, %v575_v61  ;;  %v630_v45 = vmul.f32 %v2290_v60, %v2290_v60 }
 0x1a3   :  { %v578_v7 = vpop.xlane.xlu1 %577  ;;  %v721_v8 = vmul.f32 %v1832_v62, %v705_v58 }
 0x1a4   :  { %1837 = vrsqrt.f32 %v676_v63  ;;  %v645_v9 = vsub.f32 %v613_v3, %v629_v1  ;;  %v614_v10 = vmul.f32 0.015625, %v578_v7 }
 0x1a5   :  { %v500_v13 = vpop.xlane.xlu0 %499  ;;  %v741_v14 = vmul.f32 %v2297_v6, %v721_v8 }
 0x1a6   :  { %v1834_v15 = vpop.eup %1833  ;;  %v661_v17 = vmax.f32 %v645_v9, 0.0  ;;  %v646_v18 = vsub.f32 %v614_v10, %v630_v45  ;;  %v2308_v19 = vmul.f32 0.015625, %v500_v13  ;;  %v709_v9 = vsub.f32 %v2155_v0, %v2287_v51 }
 0x1a7   :  { %v503_v20 = vpop.xlane.xlu1 %502  ;;  %v761_v22 = vadd.f32 %v2304_v41, %v741_v14  ;;  %v722_v23 = vmul.f32 %v1834_v15, %v706_v11 }
 0x1a8   :  { %v677_v25 = vadd.f32 1e-05, %v661_v17  ;;  %v662_v27 = vmax.f32 %v646_v18, 0.0  ;;  %v2311_v28 = vmul.f32 0.015625, %v503_v20  ;;  %v631_v32 = vmul.f32 %v2308_v19, %v2308_v19 }
 0x1a9   :  { %v581_v29 = vpop.xlane.xlu0 %580  ;;  %v777_v30 = vmax.f32 %v761_v22, 0.0  ;;  %v742_v44 = vmul.f32 %v2297_v6, %v722_v23  ;;  %v710_v20 = vsub.f32 %v2159_v4, %v2290_v60 }
 0x1aa   :  { %1839 = vrsqrt.f32 %v677_v25  ;;  %v678_v21 = vadd.f32 1e-05, %v662_v27  ;;  %v615_v33 = vmul.f32 0.015625, %v581_v29  ;;  %v632_v42 = vmul.f32 %v2311_v28, %v2311_v28 }
 0x1ab   :  { %1690 = vmatprep.mubr.msk.f32.mxu1 %vm479_vm2, %v777_v30  ;;  %v584_v36 = vpop.xlane.xlu1 %583  ;;  %v762_v37 = vadd.f32 %v2304_v41, %v742_v44 }
 0x1ac   :  { %v1836_v39 = vpop.eup %1835  ;;  %1841 = vrsqrt.f32 %v678_v21  ;;  %v647_v43 = vsub.f32 %v615_v33, %v631_v32  ;;  %v616_v46 = vmul.f32 0.015625, %v584_v36 }
 0x1ad   :  { %v506_v48 = vpop.xlane.xlu0 %505  ;;  %v778_v49 = vmax.f32 %v762_v37, 0.0  ;;  %v723_v50 = vmul.f32 %v1836_v39, %v707_v35 }
 0x1ae   :  { %v1838_v53 = vpop.eup %1837  ;;  %v663_v52 = vmax.f32 %v647_v43, 0.0  ;;  %v648_v31 = vsub.f32 %v616_v46, %v632_v42  ;;  %v2324_v54 = vmul.f32 0.015625, %v506_v48  ;;  %v711_v43 = vsub.f32 %v2171_v12, %v2308_v19 }
 0x1af   :  { %1691 = vmatmul.mubr.msk.f32.vlgmr.msra.gmra.mrb[0].mxu1 %vm479_vm2, %v778_v49  ;;  %v509_v55 = vpop.xlane.xlu1 %508  ;;  %v743_v58 = vmul.f32 %v2297_v6, %v723_v50  ;;  %v724_v61 = vmul.f32 %v1838_v53, %v708_v47 }
 0x1b0   :  { %v679_v62 = vadd.f32 1e-05, %v663_v52  ;;  %v664_v63 = vmax.f32 %v648_v31, 0.0  ;;  %v2328_v1 = vmul.f32 0.015625, %v509_v55  ;;  %v633_v8 = vmul.f32 %v2324_v54, %v2324_v54 }
 0x1b1   :  { %v587_v3 = vpop.xlane.xlu0 %586  ;;  %v763_v56 = vadd.f32 %v2304_v41, %v743_v58  ;;  %v744_v34 = vmul.f32 %v2297_v6, %v724_v61  ;;  %v712_v31 = vsub.f32 %v2175_v16, %v2311_v28 }
 0x1b2   :  { %1843 = vrsqrt.f32 %v679_v62  ;;  %v680_v7 = vadd.f32 1e-05, %v664_v63  ;;  %v617_v45 = vmul.f32 0.015625, %v587_v3  ;;  %v634_v15 = vmul.f32 %v2328_v1, %v2328_v1 }
 0x1b3   :  { %v590_v10 = vpop.xlane.xlu1 %589  ;;  %v779_v11 = vmax.f32 %v763_v56, 0.0  ;;  %v764_v13 = vadd.f32 %v2304_v41, %v744_v34 }
 0x1b4   :  { %v1840_v14 = vpop.eup %1839  ;;  %1845 = vrsqrt.f32 %v680_v7  ;;  %v649_v17 = vsub.f32 %v617_v45, %v633_v8  ;;  %v618_v18 = vmul.f32 0.015625, %v590_v10 }
 0x1b5   :  { %1693 = vmatprep.mubr.msk.f32.mxu1 %vm479_vm2, %v779_v11  ;;  %v512_v22 = vpop.xlane.xlu0 %511  ;;  %v780_v23 = vmax.f32 %v764_v13, 0.0  ;;  %v725_v25 = vmul.f32 %v1840_v14, %v709_v9  ;;  %v713_v14 = vsub.f32 %v2189_v24, %v2324_v54 }
 0x1b6   :  { %v1842_v0 = vpop.eup %1841  ;;  %v665_v51 = vmax.f32 %v649_v17, 0.0  ;;  %v650_v27 = vsub.f32 %v618_v18, %v634_v15  ;;  %v2342_v29 = vmul.f32 0.015625, %v512_v22 }
 0x1b7   :  { %1694 = vmatmul.mubr.msk.f32.gmra.mrb[2].mxu1 %vm479_vm2, %v780_v23  ;;  %v515_v30 = vpop.xlane.xlu1 %514  ;;  %v745_v44 = vmul.f32 %v2297_v6, %v725_v25  ;;  %v726_v21 = vmul.f32 %v1842_v0, %v710_v20  ;;  %v714_v0 = vsub.f32 %v2193_v26, %v2328_v1 }
 0x1b8   :  { %v681_v32 = vadd.f32 1e-05, %v665_v51  ;;  %v666_v33 = vmax.f32 %v650_v27, 0.0  ;;  %v2346_v35 = vmul.f32 0.015625, %v515_v30  ;;  %v635_v39 = vmul.f32 %v2342_v29, %v2342_v29 }
 0x1b9   :  { %v593_v4 = vpop.xlane.xlu0 %592  ;;  %v765_v60 = vadd.f32 %v2304_v41, %v745_v44  ;;  %v746_v36 = vmul.f32 %v2297_v6, %v726_v21 }
 0x1ba   :  { %1847 = vrsqrt.f32 %v681_v32  ;;  %v682_v37 = vadd.f32 1e-05, %v666_v33  ;;  %v619_v42 = vmul.f32 0.015625, %v593_v4  ;;  %v636_v50 = vmul.f32 %v2346_v35, %v2346_v35 }
 0x1bb   :  { %v596_v46 = vpop.xlane.xlu1 %595  ;;  %v781_v47 = vmax.f32 %v765_v60, 0.0  ;;  %v766_v48 = vadd.f32 %v2304_v41, %v746_v36 }
 0x1bc   :  { %v1844_v49 = vpop.eup %1843  ;;  %1849 = vrsqrt.f32 %v682_v37  ;;  %v651_v53 = vsub.f32 %v619_v42, %v635_v39  ;;  %v620_v52 = vmul.f32 0.015625, %v596_v46 }
 0x1bd   :  { %1696 = vmatprep.mubr.msk.f32.mxu1 %vm479_vm2, %v781_v47  ;;  %v518_v55 = vpop.xlane.xlu0 %517  ;;  %v782_v58 = vmax.f32 %v766_v48, 0.0  ;;  %v727_v61 = vmul.f32 %v1844_v49, %v711_v43  ;;  %v715_v47 = vsub.f32 %v2217_v38, %v2342_v29 }
 0x1be   :  { %v1846_v12 = vpop.eup %1845  ;;  %v667_v19 = vmax.f32 %v651_v53, 0.0  ;;  %v652_v62 = vsub.f32 %v620_v52, %v636_v50  ;;  %v2360_v63 = vmul.f32 0.015625, %v518_v55 }
 0x1bf   :  { %1697 = vmatmul.mubr.msk.f32.gmra.mrb[4].mxu1 %vm479_vm2, %v782_v58  ;;  %v521_v3 = vpop.xlane.xlu1 %520  ;;  %v747_v56 = vmul.f32 %v2297_v6, %v727_v61  ;;  %v728_v34 = vmul.f32 %v1846_v12, %v712_v31  ;;  %v716_v58 = vsub.f32 %v2221_v40, %v2346_v35 }
 0x1c0   :  { %v683_v7 = vadd.f32 1e-05, %v667_v19  ;;  %v668_v8 = vmax.f32 %v652_v62, 0.0  ;;  %v2364_v45 = vmul.f32 0.015625, %v521_v3  ;;  %v637_v11 = vmul.f32 %v2360_v63, %v2360_v63 }
 0x1c1   :  { %v599_v16 = vpop.xlane.xlu0 %598  ;;  %v767_v28 = vadd.f32 %v2304_v41, %v747_v56  ;;  %v748_v9 = vmul.f32 %v2297_v6, %v728_v34  ;;  %v717_v35 = vsub.f32 %v2245_v57, %v2360_v63 }
 0x1c2   :  { %1851 = vrsqrt.f32 %v683_v7  ;;  %v684_v10 = vadd.f32 1e-05, %v668_v8  ;;  %v621_v13 = vmul.f32 0.015625, %v599_v16  ;;  %v638_v22 = vmul.f32 %v2364_v45, %v2364_v45 }
 0x1c3   :  { %v602_v15 = vpop.xlane.xlu1 %601  ;;  %v783_v17 = vmax.f32 %v767_v28, 0.0  ;;  %v768_v18 = vadd.f32 %v2304_v41, %v748_v9 }
 0x1c4   :  { %v1848_v20 = vpop.eup %1847  ;;  %1853 = vrsqrt.f32 %v684_v10  ;;  %v653_v23 = vsub.f32 %v621_v13, %v637_v11  ;;  %v622_v25 = vmul.f32 0.015625, %v602_v15  ;;  %v718_v10 = vsub.f32 %v2249_v59, %v2364_v45 }
 0x1c5   :  { %1699 = vmatprep.mubr.msk.f32.mxu1 %vm479_vm2, %v783_v17  ;;  %v524_v51 = vpop.xlane.xlu0 %523  ;;  %v784_v27 = vmax.f32 %v768_v18, 0.0  ;;  %v729_v30 = vmul.f32 %v1848_v20, %v713_v14 }
 0x1c6   :  { %v1850_v24 = vpop.eup %1849  ;;  %v669_v54 = vmax.f32 %v653_v23, 0.0  ;;  %v654_v44 = vsub.f32 %v622_v25, %v638_v22  ;;  %v2378_v21 = vmul.f32 0.015625, %v524_v51 }
 0x1c7   :  { %1700 = vmatmul.mubr.msk.f32.gmra.mrb[6].mxu1 %vm479_vm2, %v784_v27  ;;  %v527_v32 = vpop.xlane.xlu1 %526  ;;  %v749_v33 = vmul.f32 %v2297_v6, %v729_v30  ;;  %v730_v4 = vmul.f32 %v1850_v24, %v714_v0 }
 0x1c8   :  { %v685_v60 = vadd.f32 1e-05, %v669_v54  ;;  %v670_v36 = vmax.f32 %v654_v44, 0.0  ;;  %v544_v37 = vmul.f32 0.015625, %v527_v32  ;;  %v639_v43 = vmul.f32 %v2378_v21, %v2378_v21  ;;  %v2421_v44 = vld [vmem:[%s2735_s6] ss:$0 sm:$0xff] }
 0x1c9   :  { %v605_v26 = vpop.xlane.xlu0 %604  ;;  %v769_v1 = vadd.f32 %v2304_v41, %v749_v33  ;;  %v750_v39 = vmul.f32 %v2297_v6, %v730_v4  ;;  %v719_v18 = vsub.f32 %v2261_v2, %v2378_v21 }
 0x1ca   :  { %1855 = vrsqrt.f32 %v685_v60  ;;  %v686_v42 = vadd.f32 1e-05, %v670_v36  ;;  %v623_v46 = vmul.f32 0.015625, %v605_v26  ;;  %v640_v52 = vmul.f32 %v544_v37, %v544_v37 }
 0x1cb   :  { %v608_v48 = vpop.xlane.xlu1 %607  ;;  %v785_v49 = vmax.f32 %v769_v1, 0.0  ;;  %v770_v50 = vadd.f32 %v2304_v41, %v750_v39  ;;  %v720_v22 = vsub.f32 %v2266_v5, %v544_v37 }
 0x1cc   :  { %v1852_v53 = vpop.eup %1851  ;;  %1857 = vrsqrt.f32 %v686_v42  ;;  %v655_v31 = vsub.f32 %v623_v46, %v639_v43  ;;  %v624_v55 = vmul.f32 0.015625, %v608_v48 }
 0x1cd   :  { %1702 = vmatprep.mubr.msk.f32.mxu1 %vm479_vm2, %v785_v49  ;;  %v786_v61 = vmax.f32 %v770_v50, 0.0  ;;  %v731_v12 = vmul.f32 %v1852_v53, %v715_v47 }
 0x1ce   :  { %v1854_v19 = vpop.eup %1853  ;;  %v671_v62 = vmax.f32 %v655_v31, 0.0  ;;  %v656_v3 = vsub.f32 %v624_v55, %v640_v52 }
 0x1cf   :  { %1703 = vmatmul.mubr.msk.f32.gmra.mrb[8].mxu1 %vm479_vm2, %v786_v61  ;;  %v751_v38 = vmul.f32 %v2297_v6, %v731_v12  ;;  %v732_v29 = vmul.f32 %v1854_v19, %v716_v58 }
 0x1d0   :  { %v687_v56 = vadd.f32 1e-05, %v671_v62  ;;  %v672_v34 = vmax.f32 %v656_v3, 0.0 }
 0x1d1   :  { %v771_v7 = vadd.f32 %v2304_v41, %v751_v38  ;;  %v752_v8 = vmul.f32 %v2297_v6, %v732_v29 }
 0x1d2   :  { %1859 = vrsqrt.f32 %v687_v56  ;;  %v688_v40 = vadd.f32 1e-05, %v672_v34 }
 0x1d3   :  { %v787_v16 = vmax.f32 %v771_v7, 0.0  ;;  %v772_v28 = vadd.f32 %v2304_v41, %v752_v8 }
 0x1d4   :  { %v1856_v9 = vpop.eup %1855  ;;  %1861 = vrsqrt.f32 %v688_v40 }
 0x1d5   :  { %1705 = vmatprep.mubr.msk.f32.mxu1 %vm479_vm2, %v787_v16  ;;  %v788_v11 = vmax.f32 %v772_v28, 0.0  ;;  %v733_v13 = vmul.f32 %v1856_v9, %v717_v35 }
 0x1d6   :  { %v1858_v14 = vpop.eup %1857 }
 0x1d7   :  { %1706 = vmatmul.mubr.msk.f32.gmra.mrb[10].mxu1 %vm479_vm2, %v788_v11  ;;  %v753_v15 = vmul.f32 %v2297_v6, %v733_v13  ;;  %v734_v17 = vmul.f32 %v1858_v14, %v718_v10 }
 0x1d9   :  { %v773_v57 = vadd.f32 %v2304_v41, %v753_v15  ;;  %v754_v63 = vmul.f32 %v2297_v6, %v734_v17 }
 0x1db   :  { %v789_v20 = vmax.f32 %v773_v57, 0.0  ;;  %v774_v59 = vadd.f32 %v2304_v41, %v754_v63 }
 0x1dc   :  { %v1860_v45 = vpop.eup %1859 }
 0x1dd   :  { %1708 = vmatprep.mubr.msk.f32.mxu1 %vm479_vm2, %v789_v20  ;;  %v790_v23 = vmax.f32 %v774_v59, 0.0  ;;  %v735_v25 = vmul.f32 %v1860_v45, %v719_v18 }
 0x1de   :  { %v1862_v0 = vpop.eup %1861 }
 0x1df   :  { %1709 = vmatmul.mubr.msk.f32.gmra.mrb[12].mxu1 %vm479_vm2, %v790_v23  ;;  %v755_v51 = vmul.f32 %v2297_v6, %v735_v25  ;;  %v736_v27 = vmul.f32 %v1862_v0, %v720_v22 }
 0x1e1   :  { %v775_v30 = vadd.f32 %v2304_v41, %v755_v51  ;;  %v756_v2 = vmul.f32 %v2297_v6, %v736_v27 }
 0x1e3   :  { %v791_v24 = vmax.f32 %v775_v30, 0.0  ;;  %v776_v54 = vadd.f32 %v2304_v41, %v756_v2 }
 0x1e5   :  { %1711 = vmatprep.mubr.msk.f32.mxu1 %vm479_vm2, %v791_v24  ;;  %v792_v5 = vmax.f32 %v776_v54, 0.0 }
 0x1e7   :  { %1712 = vmatmul.mubr.msk.f32.gmra.mrb[14].mxu1 %vm479_vm2, %v792_v5 }
 0x282   :  { %v1692_v21 = vpop.f32.mrb[0].mxu1 }
 0x283   :  { %v2424_v32 = vadd.f32 %v1692_v21, %v2421_v44  ;;  %v920_v33 = vpop.f32.mrb[1].mxu1 }
 0x284   :  { %v2427_v6 = vadd.f32 %v2421_v44, %v920_v33 }
 0x285   :  { %v1004_v41 = vsel %vm262_vm1, %v2424_v32, 0.0  ;;  %v1067_v4 = vmul.f32 %v2424_v32, %v2424_v32 }
 0x286   :  { %1005 = vadd.xlane.f32.xlu1 %v1004_v41  ;;  %v1001_v60 = vsel %vm262_vm1, %v2427_v6, 0.0  ;;  %v1066_v36 = vmul.f32 %v2427_v6, %v2427_v6 }
 0x287   :  { %1002 = vadd.xlane.f32.xlu0 %v1001_v60  ;;  %v1085_v37 = vsel %vm262_vm1, %v1067_v4, 0.0 }
 0x288   :  { %v1082_v1 = vsel %vm262_vm1, %v1066_v36, 0.0  ;;  %v1923_v36 = vmov 0.0|0.0  }
 0x289   :  { %1777 = vmatprep.subr.bf16.mxu1 %v1923_v36 }
 0x28a   :  { %v1695_v26 = vpop.f32.mrb[2].mxu1  ;;  %1086 = vadd.xlane.f32.xlu1 %v1085_v37 }
 0x28b   :  { %v2440_v39 = vadd.f32 %v1695_v26, %v2421_v44  ;;  %v930_v42 = vpop.f32.mrb[3].mxu1  ;;  %1083 = vadd.xlane.f32.xlu0 %v1082_v1 }
 0x28c   :  { %v2443_v43 = vadd.f32 %v2421_v44, %v930_v42 }
 0x28d   :  { %v1010_v46 = vsel %vm262_vm1, %v2440_v39, 0.0  ;;  %v1069_v47 = vmul.f32 %v2440_v39, %v2440_v39 }
 0x28e   :  { %1011 = vadd.xlane.f32.xlu1 %v1010_v46  ;;  %v1007_v48 = vsel %vm262_vm1, %v2443_v43, 0.0  ;;  %v1068_v49 = vmul.f32 %v2443_v43, %v2443_v43 }
 0x28f   :  { %1008 = vadd.xlane.f32.xlu0 %v1007_v48  ;;  %v1091_v50 = vsel %vm262_vm1, %v1069_v47, 0.0 }
 0x290   :  { %v1088_v52 = vsel %vm262_vm1, %v1068_v49, 0.0 }
 0x292   :  { %v1698_v53 = vpop.f32.mrb[4].mxu1  ;;  %1092 = vadd.xlane.f32.xlu1 %v1091_v50 }
 0x293   :  { %v2456_v31 = vadd.f32 %v1698_v53, %v2421_v44  ;;  %v940_v55 = vpop.f32.mrb[5].mxu1  ;;  %1089 = vadd.xlane.f32.xlu0 %v1088_v52 }
 0x294   :  { %v2459_v58 = vadd.f32 %v2421_v44, %v940_v55  ;;  %v1925_v55 = vmov 0.0  }
 0x295   :  { %v1016_v61 = vsel %vm262_vm1, %v2456_v31, 0.0  ;;  %v1071_v12 = vmul.f32 %v2456_v31, %v2456_v31  ;;  %1746 = vmatprep.mubr.msk.f32.mxu1 %vm1924_vm3, %v1925_v55 }
 0x296   :  { %1017 = vadd.xlane.f32.xlu1 %v1016_v61  ;;  %v1013_v19 = vsel %vm262_vm1, %v2459_v58, 0.0  ;;  %v1070_v62 = vmul.f32 %v2459_v58, %v2459_v58  ;;  %v2555_v61 = vld [vmem:[%s2736_s7] sm:$0xff] }
 0x297   :  { %1014 = vadd.xlane.f32.xlu0 %v1013_v19  ;;  %v1097_v3 = vsel %vm262_vm1, %v1071_v12, 0.0  ;;  %v1926_v12 = vmov 0  }
 0x298   :  { %v1094_v29 = vsel %vm262_vm1, %v1070_v62, 0.0  ;;  %1830 = vset.pattern.permute.xlu0 %v1926_v12 }
 0x29a   :  { %v1701_v38 = vpop.f32.mrb[6].mxu1  ;;  %1098 = vadd.xlane.f32.xlu1 %v1097_v3 }
 0x29b   :  { %v2472_v56 = vadd.f32 %v1701_v38, %v2421_v44  ;;  %v950_v34 = vpop.f32.mrb[7].mxu1  ;;  %1095 = vadd.xlane.f32.xlu0 %v1094_v29 }
 0x29c   :  { %v2475_v7 = vadd.f32 %v2421_v44, %v950_v34 }
 0x29d   :  { %v1022_v8 = vsel %vm262_vm1, %v2472_v56, 0.0  ;;  %v1073_v40 = vmul.f32 %v2472_v56, %v2472_v56 }
 0x29e   :  { %1023 = vadd.xlane.f32.xlu1 %v1022_v8  ;;  %v1019_v35 = vsel %vm262_vm1, %v2475_v7, 0.0  ;;  %v1072_v16 = vmul.f32 %v2475_v7, %v2475_v7 }
 0x29f   :  { %1020 = vadd.xlane.f32.xlu0 %v1019_v35  ;;  %v1103_v28 = vsel %vm262_vm1, %v1073_v40, 0.0 }
 0x2a0   :  { %v1100_v10 = vsel %vm262_vm1, %v1072_v16, 0.0 }
 0x2a2   :  { %v1704_v9 = vpop.f32.mrb[8].mxu1  ;;  %1104 = vadd.xlane.f32.xlu1 %v1103_v28 }
 0x2a3   :  { %v2488_v11 = vadd.f32 %v1704_v9, %v2421_v44  ;;  %v960_v13 = vpop.f32.mrb[9].mxu1  ;;  %1101 = vadd.xlane.f32.xlu0 %v1100_v10 }
 0x2a4   :  { %v2491_v14 = vadd.f32 %v2421_v44, %v960_v13 }
 0x2a5   :  { %v1028_v15 = vsel %vm262_vm1, %v2488_v11, 0.0  ;;  %v1075_v17 = vmul.f32 %v2488_v11, %v2488_v11 }
 0x2a6   :  { %1029 = vadd.xlane.f32.xlu1 %v1028_v15  ;;  %v1025_v57 = vsel %vm262_vm1, %v2491_v14, 0.0  ;;  %v1074_v63 = vmul.f32 %v2491_v14, %v2491_v14 }
 0x2a7   :  { %1026 = vadd.xlane.f32.xlu0 %v1025_v57  ;;  %v1109_v18 = vsel %vm262_vm1, %v1075_v17, 0.0 }
 0x2a8   :  { %v1106_v59 = vsel %vm262_vm1, %v1074_v63, 0.0 }
 0x2aa   :  { %v1707_v20 = vpop.f32.mrb[10].mxu1  ;;  %1110 = vadd.xlane.f32.xlu1 %v1109_v18 }
 0x2ab   :  { %v2504_v45 = vadd.f32 %v1707_v20, %v2421_v44  ;;  %v970_v22 = vpop.f32.mrb[11].mxu1  ;;  %1107 = vadd.xlane.f32.xlu0 %v1106_v59 }
 0x2ac   :  { %v2507_v23 = vadd.f32 %v2421_v44, %v970_v22 }
 0x2ad   :  { %v1034_v25 = vsel %vm262_vm1, %v2504_v45, 0.0  ;;  %v1077_v0 = vmul.f32 %v2504_v45, %v2504_v45 }
 0x2ae   :  { %1035 = vadd.xlane.f32.xlu1 %v1034_v25  ;;  %v1031_v51 = vsel %vm262_vm1, %v2507_v23, 0.0  ;;  %v1076_v27 = vmul.f32 %v2507_v23, %v2507_v23 }
 0x2af   :  { %1032 = vadd.xlane.f32.xlu0 %v1031_v51  ;;  %v1115_v30 = vsel %vm262_vm1, %v1077_v0, 0.0 }
 0x2b0   :  { %v1112_v24 = vsel %vm262_vm1, %v1076_v27, 0.0 }
 0x2b2   :  { %v1710_v2 = vpop.f32.mrb[12].mxu1  ;;  %1116 = vadd.xlane.f32.xlu1 %v1115_v30 }
 0x2b3   :  { %v2520_v54 = vadd.f32 %v1710_v2, %v2421_v44  ;;  %v980_v5 = vpop.f32.mrb[13].mxu1  ;;  %1113 = vadd.xlane.f32.xlu0 %v1112_v24 }
 0x2b4   :  { %v2523_v21 = vadd.f32 %v2421_v44, %v980_v5 }
 0x2b5   :  { %v1040_v33 = vsel %vm262_vm1, %v2520_v54, 0.0  ;;  %v1079_v41 = vmul.f32 %v2520_v54, %v2520_v54 }
 0x2b6   :  { %1041 = vadd.xlane.f32.xlu1 %v1040_v33  ;;  %v1037_v4 = vsel %vm262_vm1, %v2523_v21, 0.0  ;;  %v1078_v60 = vmul.f32 %v2523_v21, %v2523_v21 }
 0x2b7   :  { %1038 = vadd.xlane.f32.xlu0 %v1037_v4  ;;  %v1121_v37 = vsel %vm262_vm1, %v1079_v41, 0.0 }
 0x2b8   :  { %v1118_v1 = vsel %vm262_vm1, %v1078_v60, 0.0 }
 0x2ba   :  { %1122 = vadd.xlane.f32.xlu1 %v1121_v37  ;;  %v1713_v26 = vpop.f32.mrb[14].mxu1 }
 0x2bb   :  { %v2537_v42 = vadd.f32 %v1713_v26, %v2421_v44  ;;  %1119 = vadd.xlane.f32.xlu0 %v1118_v1  ;;  %v990_v46 = vpop.f32.mrb[15].mxu1 }
 0x2bc   :  { %v2540_v47 = vadd.f32 %v2421_v44, %v990_v46 }
 0x2bd   :  { %v1046_v48 = vsel %vm262_vm1, %v2537_v42, 0.0  ;;  %v1081_v49 = vmul.f32 %v2537_v42, %v2537_v42 }
 0x2be   :  { %1047 = vadd.xlane.f32.xlu1 %v1046_v48  ;;  %v1043_v50 = vsel %vm262_vm1, %v2540_v47, 0.0  ;;  %v1080_v53 = vmul.f32 %v2540_v47, %v2540_v47 }
 0x2bf   :  { %1044 = vadd.xlane.f32.xlu0 %v1043_v50  ;;  %v1127_v52 = vsel %vm262_vm1, %v1081_v49, 0.0 }
 0x2c0   :  { %v1124_v44 = vsel %vm262_vm1, %v1080_v53, 0.0 }
 0x2c2   :  { %1128 = vadd.xlane.f32.xlu1 %v1127_v52 }
 0x2c3   :  { %1125 = vadd.xlane.f32.xlu0 %v1124_v44 }
 0x2d9   :  { %1437 = vperm.xlu0 %1830, %v2555_v61  }
 0x313   :  { %v1006_v19 = vpop.xlane.xlu1 %1005 }
 0x314   :  { %v1051_v62 = vmul.f32 0.03125, %v1006_v19  ;;  %v1003_v3 = vpop.xlane.xlu0 %1002  ;;  %v2579_v19 = vld [vmem:[%s2735_s6 + $0x1] ss:$0 sm:$0xff] }
 0x315   :  { %v1050_v38 = vmul.f32 0.03125, %v1003_v3 }
 0x316   :  { %v1147_v34 = vmul.f32 %v1051_v62, %v1051_v62  ;;  %v1227_v50 = vsub.f32 %v2424_v32, %v1051_v62 }
 0x317   :  { %v1087_v29 = vpop.xlane.xlu1 %1086  ;;  %v1146_v35 = vmul.f32 %v1050_v38, %v1050_v38  ;;  %v1226_v55 = vsub.f32 %v2427_v6, %v1050_v38 }
 0x318   :  { %v1131_v8 = vmul.f32 0.03125, %v1087_v29  ;;  %v1084_v40 = vpop.xlane.xlu0 %1083 }
 0x319   :  { %v1130_v16 = vmul.f32 0.03125, %v1084_v40 }
 0x31a   :  { %v1163_v28 = vsub.f32 %v1131_v8, %v1147_v34 }
 0x31b   :  { %v1162_v9 = vsub.f32 %v1130_v16, %v1146_v35  ;;  %v1012_v10 = vpop.xlane.xlu1 %1011  ;;  %v2586_v16 = vld [vmem:[%s2735_s6 + $0x2] ss:$0 sm:$0xff]  ;;  %s1927_s6 = smov [#allocation2]  }
 0x31c   :  { %v1179_v13 = vmax.f32 %v1163_v28, 0.0  ;;  %v2558_v15 = vmul.f32 0.03125, %v1012_v10  ;;  %v1009_v17 = vpop.xlane.xlu0 %1008  ;;  %s1455_s30 = sshll.u32 %s1927_s6, 4  ;;  %s1456_s30 = int_to_ptr.vmem [resolvable:$true] %s1455_s30 }
 0x31d   :  { %v1178_v57 = vmax.f32 %v1162_v9, 0.0  ;;  %v2560_v63 = vmul.f32 0.03125, %v1009_v17  ;;  %s1899_s0 = scalar_lea.vmem %s1456_s30, 16  ;;  %s1903_s9 = scalar_lea.vmem %s1456_s30, 32 }
 0x31e   :  { %v1195_v18 = vadd.f32 1e-05, %v1179_v13  ;;  %v1149_v22 = vmul.f32 %v2558_v15, %v2558_v15  ;;  %v1229_v13 = vsub.f32 %v2440_v39, %v2558_v15  ;;  %p1900_p0 = scmp.ne.s32.totalorder %s1456_s30, %s1899_s0  ;;  %p1904_p1 = scmp.lt.s32.totalorder %s1456_s30, %s1456_s30 }
 0x31f   :  { %v1194_v20 = vadd.f32 1e-05, %v1178_v57  ;;  %v1093_v59 = vpop.xlane.xlu1 %1092  ;;  %v1148_v51 = vmul.f32 %v2560_v63, %v2560_v63  ;;  %v1228_v39 = vsub.f32 %v2443_v43, %v2560_v63  ;;  %p1905_p2 = scmp.lt.s32.totalorder %s1903_s9, %s1899_s0 }
 0x320   :  { %1863 = vrsqrt.f32 %v1195_v18  ;;  %v1133_v25 = vmul.f32 0.03125, %v1093_v59  ;;  %v1090_v0 = vpop.xlane.xlu0 %1089 }
 0x321   :  { %1865 = vrsqrt.f32 %v1194_v20  ;;  %v1132_v27 = vmul.f32 0.03125, %v1090_v0  ;;  %p1906_p3 = por %p1905_p2, %p1904_p1 }
 0x322   :  { %v1165_v30 = vsub.f32 %v1133_v25, %v1149_v22 }
 0x323   :  { %v1164_v2 = vsub.f32 %v1132_v27, %v1148_v51  ;;  %v1018_v24 = vpop.xlane.xlu1 %1017  ;;  %p1907_p4 = pnand %p1906_p3, %p1900_p0 }
 0x324   :  { %v1181_v5 = vmax.f32 %v1165_v30, 0.0  ;;  %v2566_v33 = vmul.f32 0.03125, %v1018_v24  ;;  %v1015_v41 = vpop.xlane.xlu0 %1014 }
 0x325   :  { %v1180_v4 = vmax.f32 %v1164_v2, 0.0  ;;  %v2568_v60 = vmul.f32 0.03125, %v1015_v41 }
 0x326   :  { %v1197_v37 = vadd.f32 1e-05, %v1181_v5  ;;  %v1151_v46 = vmul.f32 %v2566_v33, %v2566_v33 }
 0x327   :  { %v1196_v26 = vadd.f32 1e-05, %v1180_v4  ;;  %v1099_v1 = vpop.xlane.xlu1 %1098  ;;  %v1150_v53 = vmul.f32 %v2568_v60, %v2568_v60 }
 0x328   :  { %1867 = vrsqrt.f32 %v1197_v37  ;;  %v1135_v48 = vmul.f32 0.03125, %v1099_v1  ;;  %v1096_v49 = vpop.xlane.xlu0 %1095 }
 0x329   :  { %1869 = vrsqrt.f32 %v1196_v26  ;;  %v1134_v52 = vmul.f32 0.03125, %v1096_v49 }
 0x32a   :  { %v1864_v44 = vpop.eup %1863  ;;  %v1167_v12 = vsub.f32 %v1135_v48, %v1151_v46 }
 0x32b   :  { %v1866_v3 = vpop.eup %1865  ;;  %v1243_v29 = vmul.f32 %v1864_v44, %v1227_v50  ;;  %v1166_v34 = vsub.f32 %v1134_v52, %v1150_v53  ;;  %v1024_v8 = vpop.xlane.xlu1 %1023  ;;  %v1231_v44 = vsub.f32 %v2456_v31, %v2566_v33 }
 0x32c   :  { %v1242_v40 = vmul.f32 %v1866_v3, %v1226_v55  ;;  %v1183_v32 = vmax.f32 %v1167_v12, 0.0  ;;  %v2581_v62 = vmul.f32 0.03125, %v1024_v8  ;;  %v1021_v35 = vpop.xlane.xlu0 %1020 }
 0x32d   :  { %v1182_v6 = vmax.f32 %v1166_v34, 0.0  ;;  %v2588_v38 = vmul.f32 0.03125, %v1021_v35  ;;  %v1263_v28 = vmul.f32 %v2579_v19, %v1243_v29 }
 0x32e   :  { %v1199_v9 = vadd.f32 1e-05, %v1183_v32  ;;  %v1262_v10 = vmul.f32 %v2579_v19, %v1242_v40  ;;  %v1153_v20 = vmul.f32 %v2581_v62, %v2581_v62 }
 0x32f   :  { %v1198_v17 = vadd.f32 1e-05, %v1182_v6  ;;  %v1105_v57 = vpop.xlane.xlu1 %1104  ;;  %v1283_v18 = vadd.f32 %v2586_v16, %v1263_v28  ;;  %v1152_v0 = vmul.f32 %v2588_v38, %v2588_v38  ;;  %v1230_v6 = vsub.f32 %v2459_v58, %v2568_v60 }
 0x330   :  { %1871 = vrsqrt.f32 %v1199_v9  ;;  %v1137_v59 = vmul.f32 0.03125, %v1105_v57  ;;  %v1102_v22 = vpop.xlane.xlu0 %1101  ;;  %v1282_v25 = vadd.f32 %v2586_v16, %v1262_v10  ;;  %v1233_v60 = vsub.f32 %v2472_v56, %v2581_v62 }
 0x331   :  { %1873 = vrsqrt.f32 %v1198_v17  ;;  %v1136_v51 = vmul.f32 0.03125, %v1102_v22  ;;  %v1299_v27 = vmax.f32 %v1283_v18, 0.0 }
 0x332   :  { %v1868_v30 = vpop.eup %1867  ;;  %v1169_v15 = vsub.f32 %v1137_v59, %v1153_v20  ;;  %v1298_v2 = vmax.f32 %v1282_v25, 0.0 }
 0x333   :  { %v1870_v24 = vpop.eup %1869  ;;  %v1245_v5 = vmul.f32 %v1868_v30, %v1229_v13  ;;  %v1168_v41 = vsub.f32 %v1136_v51, %v1152_v0  ;;  %v1030_v4 = vpop.xlane.xlu1 %1029 }
 0x334   :  { %v1244_v26 = vmul.f32 %v1870_v24, %v1228_v39  ;;  %v1185_v1 = vmax.f32 %v1169_v15, 0.0  ;;  %v2608_v46 = vmul.f32 0.03125, %v1030_v4  ;;  %v1027_v48 = vpop.xlane.xlu0 %1026  ;;  %v1778_v49 = vpack.c.bf16 %v1299_v27, %v1298_v2 }
 0x335   :  { %v1184_v50 = vmax.f32 %v1168_v41, 0.0  ;;  %v2610_v43 = vmul.f32 0.03125, %v1027_v48  ;;  %v1265_v63 = vmul.f32 %v2579_v19, %v1245_v5  ;;  %v1232_v48 = vsub.f32 %v2475_v7, %v2588_v38 }
 0x336   :  { %v1201_v53 = vadd.f32 1e-05, %v1185_v1  ;;  %1780 = vmatpush3.bf16.xpose.msk.msra.mxu1 %vm2604_vm4, %v1778_v49  ;;  %v1264_v52 = vmul.f32 %v2579_v19, %v1244_v26  ;;  %v1155_v29 = vmul.f32 %v2608_v46, %v2608_v46  ;;  %v1235_v38 = vsub.f32 %v2488_v11, %v2608_v46 }
 0x337   :  { %v1200_v55 = vadd.f32 1e-05, %v1184_v50  ;;  %v1111_v12 = vpop.xlane.xlu1 %1110  ;;  %1781 = vmatprep.subr.bf16.mxu1 %v1923_v36  ;;  %v1285_v3 = vadd.f32 %v2586_v16, %v1265_v63  ;;  %v1154_v32 = vmul.f32 %v2610_v43, %v2610_v43 }
 0x338   :  { %1875 = vrsqrt.f32 %v1201_v53  ;;  %v1139_v34 = vmul.f32 0.03125, %v1111_v12  ;;  %v1108_v8 = vpop.xlane.xlu0 %1107  ;;  %v1284_v40 = vadd.f32 %v2586_v16, %v1264_v52 }
 0x339   :  { %1877 = vrsqrt.f32 %v1200_v55  ;;  %v1138_v35 = vmul.f32 0.03125, %v1108_v8  ;;  %v1301_v31 = vmax.f32 %v1285_v3, 0.0 }
 0x33a   :  { %v1872_v33 = vpop.eup %1871  ;;  %v1171_v28 = vsub.f32 %v1139_v34, %v1155_v29  ;;  %v1300_v9 = vmax.f32 %v1284_v40, 0.0 }
 0x33b   :  { %v1874_v10 = vpop.eup %1873  ;;  %v1247_v13 = vmul.f32 %v1872_v33, %v1231_v44  ;;  %v1170_v17 = vsub.f32 %v1138_v35, %v1154_v32  ;;  %v1036_v57 = vpop.xlane.xlu1 %1035 }
 0x33c   :  { %v1246_v18 = vmul.f32 %v1874_v10, %v1230_v6  ;;  %v1187_v20 = vmax.f32 %v1171_v28, 0.0  ;;  %v2627_v59 = vmul.f32 0.03125, %v1036_v57  ;;  %v1033_v22 = vpop.xlane.xlu0 %1032  ;;  %v1782_v25 = vpack.c.bf16 %v1301_v31, %v1300_v9 }
 0x33d   :  { %v1186_v0 = vmax.f32 %v1170_v17, 0.0  ;;  %v2629_v51 = vmul.f32 0.03125, %v1033_v22  ;;  %v1267_v27 = vmul.f32 %v2579_v19, %v1247_v13 }
 0x33e   :  { %v1203_v30 = vadd.f32 1e-05, %v1187_v20  ;;  %1784 = vmatpush3.bf16.xpose.msk.msra.mxu1 %vm2604_vm4, %v1782_v25  ;;  %v1266_v58 = vmul.f32 %v2579_v19, %v1246_v18  ;;  %v1157_v24 = vmul.f32 %v2627_v59, %v2627_v59  ;;  %v1234_v18 = vsub.f32 %v2491_v14, %v2610_v43 }
 0x33f   :  { %v1202_v39 = vadd.f32 1e-05, %v1186_v0  ;;  %v1117_v15 = vpop.xlane.xlu1 %1116  ;;  %1785 = vmatprep.subr.bf16.mxu1 %v1923_v36  ;;  %v1287_v2 = vadd.f32 %v2586_v16, %v1267_v27  ;;  %v1156_v26 = vmul.f32 %v2629_v51, %v2629_v51  ;;  %v1237_v43 = vsub.f32 %v2504_v45, %v2627_v59 }
 0x340   :  { %1879 = vrsqrt.f32 %v1203_v30  ;;  %v1141_v5 = vmul.f32 0.03125, %v1117_v15  ;;  %v1114_v41 = vpop.xlane.xlu0 %1113  ;;  %v1286_v4 = vadd.f32 %v2586_v16, %v1266_v58 }
 0x341   :  { %1881 = vrsqrt.f32 %v1202_v39  ;;  %v1140_v1 = vmul.f32 0.03125, %v1114_v41  ;;  %v1303_v56 = vmax.f32 %v1287_v2, 0.0 }
 0x342   :  { %v1876_v62 = vpop.eup %1875  ;;  %v1173_v49 = vsub.f32 %v1141_v5, %v1157_v24  ;;  %v1302_v50 = vmax.f32 %v1286_v4, 0.0 }
 0x343   :  { %v1878_v63 = vpop.eup %1877  ;;  %v1249_v53 = vmul.f32 %v1876_v62, %v1233_v60  ;;  %v1172_v52 = vsub.f32 %v1140_v1, %v1156_v26  ;;  %v1042_v44 = vpop.xlane.xlu1 %1041 }
 0x344   :  { %v1248_v55 = vmul.f32 %v1878_v63, %v1232_v48  ;;  %v1189_v12 = vmax.f32 %v1173_v49, 0.0  ;;  %v2646_v3 = vmul.f32 0.03125, %v1042_v44  ;;  %v1039_v29 = vpop.xlane.xlu0 %1038  ;;  %v1786_v34 = vpack.c.bf16 %v1303_v56, %v1302_v50 }
 0x345   :  { %v1188_v8 = vmax.f32 %v1172_v52, 0.0  ;;  %v2648_v40 = vmul.f32 0.03125, %v1039_v29  ;;  %v1269_v32 = vmul.f32 %v2579_v19, %v1249_v53  ;;  %v1236_v52 = vsub.f32 %v2507_v23, %v2629_v51 }
 0x346   :  { %v1205_v35 = vadd.f32 1e-05, %v1189_v12  ;;  %1788 = vmatpush3.bf16.xpose.msk.msra.mxu1 %vm2604_vm4, %v1786_v34  ;;  %v1268_v7 = vmul.f32 %v2579_v19, %v1248_v55  ;;  %v1159_v28 = vmul.f32 %v2646_v3, %v2646_v3 }
 0x347   :  { %v1204_v31 = vadd.f32 1e-05, %v1188_v8  ;;  %v1123_v33 = vpop.xlane.xlu1 %1122  ;;  %1789 = vmatprep.subr.bf16.mxu1 %v1923_v36  ;;  %v1289_v6 = vadd.f32 %v2586_v16, %v1269_v32  ;;  %v1158_v17 = vmul.f32 %v2648_v40, %v2648_v40 }
 0x348   :  { %1883 = vrsqrt.f32 %v1205_v35  ;;  %v1143_v9 = vmul.f32 0.03125, %v1123_v33  ;;  %v1120_v10 = vpop.xlane.xlu0 %1119  ;;  %v1288_v13 = vadd.f32 %v2586_v16, %v1268_v7 }
 0x349   :  { %1885 = vrsqrt.f32 %v1204_v31  ;;  %v1142_v57 = vmul.f32 0.03125, %v1120_v10  ;;  %v1305_v11 = vmax.f32 %v1289_v6, 0.0 }
 0x34a   :  { %v1880_v46 = vpop.eup %1879  ;;  %v1175_v20 = vsub.f32 %v1143_v9, %v1159_v28  ;;  %v1304_v22 = vmax.f32 %v1288_v13, 0.0  ;;  %v1239_v28 = vsub.f32 %v2520_v54, %v2646_v3  ;;  %v1238_v13 = vsub.f32 %v2523_v21, %v2648_v40 }
 0x34b   :  { %v1882_v25 = vpop.eup %1881  ;;  %v1251_v0 = vmul.f32 %v1880_v46, %v1235_v38  ;;  %v1174_v27 = vsub.f32 %v1142_v57, %v1158_v17  ;;  %v1048_v30 = vpop.xlane.xlu1 %1047 }
 0x34c   :  { %v1250_v58 = vmul.f32 %v1882_v25, %v1234_v18  ;;  %v1191_v60 = vmax.f32 %v1175_v20, 0.0  ;;  %v2665_v39 = vmul.f32 0.03125, %v1048_v30  ;;  %v1045_v15 = vpop.xlane.xlu0 %1044  ;;  %v1790_v2 = vpack.c.bf16 %v1305_v11, %v1304_v22 }
 0x34d   :  { %v1190_v24 = vmax.f32 %v1174_v27, 0.0  ;;  %v2667_v5 = vmul.f32 0.03125, %v1045_v15  ;;  %v1271_v41 = vmul.f32 %v2579_v19, %v1251_v0 }
 0x34e   :  { %v1207_v4 = vadd.f32 1e-05, %v1191_v60  ;;  %1792 = vmatpush3.bf16.xpose.msk.msra.mxu1 %vm2604_vm4, %v1790_v2  ;;  %v1270_v14 = vmul.f32 %v2579_v19, %v1250_v58  ;;  %v1161_v62 = vmul.f32 %v2665_v39, %v2665_v39  ;;  %v1241_v21 = vsub.f32 %v2537_v42, %v2665_v39 }
 0x34f   :  { %v1206_v26 = vadd.f32 1e-05, %v1190_v24  ;;  %v1129_v1 = vpop.xlane.xlu1 %1128  ;;  %1793 = vmatprep.subr.bf16.mxu1 %v1923_v36  ;;  %v1291_v56 = vadd.f32 %v2586_v16, %v1271_v41  ;;  %v1160_v63 = vmul.f32 %v2667_v5, %v2667_v5  ;;  %v1240_v0 = vsub.f32 %v2540_v47, %v2667_v5 }
 0x350   :  { %1887 = vrsqrt.f32 %v1207_v4  ;;  %v1145_v48 = vmul.f32 0.03125, %v1129_v1  ;;  %v1126_v49 = vpop.xlane.xlu0 %1125  ;;  %v1290_v50 = vadd.f32 %v2586_v16, %v1270_v14 }
 0x351   :  { %1889 = vrsqrt.f32 %v1206_v26  ;;  %v1144_v53 = vmul.f32 0.03125, %v1126_v49  ;;  %v1307_v45 = vmax.f32 %v1291_v56, 0.0 }
 0x352   :  { %v1884_v59 = vpop.eup %1883  ;;  %v1177_v44 = vsub.f32 %v1145_v48, %v1161_v62  ;;  %v1306_v55 = vmax.f32 %v1290_v50, 0.0 }
 0x353   :  { %v1886_v12 = vpop.eup %1885  ;;  %v1253_v29 = vmul.f32 %v1884_v59, %v1237_v43  ;;  %v1176_v34 = vsub.f32 %v1144_v53, %v1160_v63 }
 0x354   :  { %v1252_v8 = vmul.f32 %v1886_v12, %v1236_v52  ;;  %v1193_v32 = vmax.f32 %v1177_v44, 0.0  ;;  %v1794_v35 = vpack.c.bf16 %v1307_v45, %v1306_v55 }
 0x355   :  { %v1192_v7 = vmax.f32 %v1176_v34, 0.0  ;;  %v1273_v38 = vmul.f32 %v2579_v19, %v1253_v29 }
 0x356   :  { %v1209_v31 = vadd.f32 1e-05, %v1193_v32  ;;  %1796 = vmatpush3.bf16.xpose.msk.msra.mxu1 %vm2604_vm4, %v1794_v35  ;;  %v1272_v33 = vmul.f32 %v2579_v19, %v1252_v8 }
 0x357   :  { %v1208_v6 = vadd.f32 1e-05, %v1192_v7  ;;  %1797 = vmatprep.subr.bf16.mxu1 %v1923_v36  ;;  %v1293_v23 = vadd.f32 %v2586_v16, %v1273_v38 }
 0x358   :  { %1891 = vrsqrt.f32 %v1209_v31  ;;  %v1292_v51 = vadd.f32 %v2586_v16, %v1272_v33  ;;  %v1438_v4 = vpop.permute.xlu0 %1437 }
 0x359   :  { %1893 = vrsqrt.f32 %v1208_v6  ;;  %v1309_v9 = vmax.f32 %v1293_v23, 0.0  ;;  %v1439_v14 = vrot.slane %v1438_v4, 1 }
 0x35a   :  { %v1888_v10 = vpop.eup %1887  ;;  %v1308_v17 = vmax.f32 %v1292_v51, 0.0 }
 0x35b   :  { %v1890_v57 = vpop.eup %1889  ;;  %v1255_v11 = vmul.f32 %v1888_v10, %v1239_v28 }
 0x35c   :  { %v1254_v46 = vmul.f32 %v1890_v57, %v1238_v13  ;;  %v1798_v18 = vpack.c.bf16 %v1309_v9, %v1308_v17 }
 0x35d   :  { %v1275_v20 = vmul.f32 %v2579_v19, %v1255_v11 }
 0x35e   :  { %1800 = vmatpush3.bf16.xpose.msk.msra.mxu1 %vm2604_vm4, %v1798_v18  ;;  %v1274_v22 = vmul.f32 %v2579_v19, %v1254_v46 }
 0x35f   :  { %1801 = vmatprep.subr.bf16.mxu1 %v1923_v36  ;;  %v1295_v54 = vadd.f32 %v2586_v16, %v1275_v20 }
 0x360   :  { %v1294_v3 = vadd.f32 %v2586_v16, %v1274_v22 }
 0x361   :  { %v1311_v40 = vmax.f32 %v1295_v54, 0.0 }
 0x362   :  { %v1892_v25 = vpop.eup %1891  ;;  %v1310_v27 = vmax.f32 %v1294_v3, 0.0 }
 0x363   :  { %v1894_v30 = vpop.eup %1893  ;;  %v1257_v58 = vmul.f32 %v1892_v25, %v1241_v21 }
 0x364   :  { %v1256_v60 = vmul.f32 %v1894_v30, %v1240_v0  ;;  %v1802_v15 = vpack.c.bf16 %v1311_v40, %v1310_v27 }
 0x365   :  { %v1277_v2 = vmul.f32 %v2579_v19, %v1257_v58 }
 0x366   :  { %1804 = vmatpush3.bf16.xpose.msk.msra.mxu1 %vm2604_vm4, %v1802_v15  ;;  %v1276_v24 = vmul.f32 %v2579_v19, %v1256_v60 }
 0x367   :  { %1805 = vmatprep.subr.bf16.mxu1 %v1923_v36  ;;  %v1297_v42 = vadd.f32 %v2586_v16, %v1277_v2 }
 0x368   :  { %v1296_v39 = vadd.f32 %v2586_v16, %v1276_v24 }
 0x369   :  { %v1313_v41 = vmax.f32 %v1297_v42, 0.0 }
 0x36a   :  { %v1312_v47 = vmax.f32 %v1296_v39, 0.0 }
 0x36c   :  { %v1806_v5 = vpack.c.bf16 %v1313_v41, %v1312_v47 }
 0x36e   :  { %1808 = vmatpush3.bf16.xpose.msk.msra.mxu1 %vm2604_vm4, %v1806_v5 }
 0x375   :  { %1747 = vmatmul.mubr.msk.f32.vlgmr.msra.gmra.mrb[16].mxu1 %vm262_vm1, %v2555_v61 }
 0x448   :  { %v1432_v43 = vpop.f32.mrb[16].mxu1 }
 0x449   :  { %v1441_v26 = vadd.f32 %v1439_v14, %v1432_v43  ;;  %v1748_v19 = vpop.f32.mrb[17].mxu1 }
 0x44b   :  { %v1534_v1 = vmul.f32 -1.442695, %v1441_v26 }
 0x44d   :  { %1895 = vpow2.f32 %v1534_v1 }
 0x457   :  { %v1896_v36 = vpop.eup %1895 }
 0x458   :  { %v1445_v56 = vadd.f32 1.0, %v1896_v36 }
 0x45a   :  { %1897 = vrcp.f32 %v1445_v56 }
 0x464   :  { %v1898_v16 = vpop.eup %1897 }
 0x465   :  { %1448 = vst [vmem:[#allocation2] sm:$0x1] %v1898_v16 }
 0x466   :  { %1910 = shalt.err (!%p1907_p4)
}
 0x467   :  { %s1911_s12 = scalar_lea.hbm %s2737_s8, 16 }
 0x468   :  { %p1912_p5 = scmp.ne.s32.totalorder %s2737_s8, %s1911_s12  ;;  %p1915_p6 = scmp.lt.u32.totalorder %s1911_s12, %s2737_s8 }
 0x46a   :  { %p1917_p7 = pnand %p1915_p6, %p1912_p5 }
 0x46c   :  { %1920 = shalt.err (!%p1917_p7)
}
 0x46d   :  { %1458 = dma.vmem_to_hbm [thread:$0]  %s1456_s30, 16, %s2737_s8, [#allocation3]  }
 0x46e   :  { %1921 = dma.done.wait [#allocation3], 16  }
 0x46f   :  { %1922 = vsyncadd [#allocation3], 4294967280 }
 0x470   :  { %1462 = vsyncpa [#allocation3], 1 }

</bundles_post_ra>
